<compile_context>
chip_gen: v7x
topology: tpu7x:2x2x1
jax: 0.10.0
libtpu: 0.0.40
codegen_flags: <defaults>
</compile_context>

<pallas_src>
import math

import jax
import jax.numpy as jnp
from jax.experimental import pallas as pl
from jax.experimental.pallas import tpu as pltpu


def _critic_kernel(x_ref, w1_ref, b1_ref, w2_ref, b2_ref, w3_ref, b3_ref, o_ref):
    # Layer 1: [TB, D_in] @ [D_in, fc1]  (bf16 MXU, f32 accumulate)
    x = x_ref[...].astype(jnp.bfloat16)
    h1 = jnp.dot(x, w1_ref[...].astype(jnp.bfloat16),
                 preferred_element_type=jnp.float32) + b1_ref[...]
    h1 = jnp.maximum(h1, 0.0)  # ReLU (f32, VPU)

    # Layer 2: [TB, fc1] @ [fc1, fc2]  (bf16 MXU, f32 accumulate) -- the dominant matmul
    h2 = jnp.dot(h1.astype(jnp.bfloat16), w2_ref[...].astype(jnp.bfloat16),
                 preferred_element_type=jnp.float32) + b2_ref[...]
    h2 = jnp.maximum(h2, 0.0)  # ReLU (f32, VPU)

    # Layer 3 (fc2 -> 1): elementwise multiply + lane reduction (VPU/XLU) instead of a
    # 256x1 MXU matmul; w3 is stored as a [1, fc2] row vector. Stays fully in f32.
    v = jnp.sum(h2 * w3_ref[...], axis=-1, keepdims=True) + b3_ref[...]
    o_ref[...] = v.astype(o_ref.dtype)


def _round_up(x, m):
    return ((x + m - 1) // m) * m


def critic_forward(state, params, *, block_batch=1024):
    """Run the fused critic MLP kernel. state: [B, D_in] -> value: [B, 1]."""
    w1, b1, w2, b2, w3, b3 = params
    B, D_in = state.shape
    fc1 = w1.shape[1]
    fc2 = w2.shape[1]

    # Batch tile: multiple of 256 for MXU M-alignment (v6e/v7x), capped so VMEM stays
    # comfortable on v7x (64 MiB physical / 32 MiB scoped default).
    TB = min(block_batch, _round_up(max(B, 1), 256))
    B_pad = _round_up(B, TB)
    if B_pad != B:
        state = jnp.pad(state, ((0, B_pad - B), (0, 0)))

    grid = (B_pad // TB,)

    def const_spec(shape):
        # Constant block index -> DMA'd once, resident across all batch tiles.
        return pl.BlockSpec(shape, lambda i: (0, 0))

    flops = 2 * B_pad * (D_in * fc1 + fc1 * fc2 + fc2 * 1)
    bytes_accessed = (
        B_pad * D_in * 4 + B_pad * 1 * 4
        + (D_in * fc1 + fc1 + fc1 * fc2 + fc2 + fc2 + 1) * 4
    )

    out = pl.pallas_call(
        _critic_kernel,
        out_shape=jax.ShapeDtypeStruct((B_pad, 1), jnp.float32),
        grid=grid,
        in_specs=[
            pl.BlockSpec((TB, D_in), lambda i: (i, 0)),   # x: tiled over batch
            const_spec((D_in, fc1)),                      # w1 (resident)
            const_spec((1, fc1)),                         # b1
            const_spec((fc1, fc2)),                       # w2
            const_spec((1, fc2)),                         # b2
            const_spec((1, fc2)),                         # w3 as row vector
            const_spec((1, 1)),                           # b3
        ],
        out_specs=pl.BlockSpec((TB, 1), lambda i: (i, 0)),
        compiler_params=pltpu.CompilerParams(
            dimension_semantics=("parallel",),            # megacore split on v7x
        ),
        cost_estimate=pl.CostEstimate(
            flops=flops, transcendentals=0, bytes_accessed=bytes_accessed),
    )(state, w1, b1, w2, b2, w3, b3)

    return out[:B]


def init_params(key, input_dim, fc1_dims=256, fc2_dims=256):
    """Deterministic init mimicking torch.nn.Linear default U(-1/sqrt(fan_in), 1/sqrt(fan_in)).

    Weights are stored as [in_features, out_features]; biases as [1, out_features].
    The final layer's weight is stored as a [1, fc2_dims] row vector so the kernel can do a
    multiply + lane-reduction instead of an N=1 MXU matmul.
    """
    keys = jax.random.split(key, 6)

    def linear(kw, kb, fan_in, fan_out):
        bound = 1.0 / math.sqrt(fan_in)
        w = jax.random.uniform(kw, (fan_in, fan_out), jnp.float32, -bound, bound)
        b = jax.random.uniform(kb, (1, fan_out), jnp.float32, -bound, bound)
        return w, b

    w1, b1 = linear(keys[0], keys[1], input_dim, fc1_dims)
    w2, b2 = linear(keys[2], keys[3], fc1_dims, fc2_dims)
    w3_col, b3 = linear(keys[4], keys[5], fc2_dims, 1)
    w3 = w3_col.T  # [1, fc2_dims]
    return (w1, b1, w2, b2, w3, b3)


def critic_reference(state, params, *, bf16_matmuls=True):
    """Pure-JAX reference of the same forward pass (optionally matching the bf16 MXU casts)."""
    w1, b1, w2, b2, w3, b3 = params
    cast = (lambda a: a.astype(jnp.bfloat16)) if bf16_matmuls else (lambda a: a)
    h1 = jnp.maximum(
        jnp.dot(cast(state), cast(w1), preferred_element_type=jnp.float32) + b1, 0.0)
    h2 = jnp.maximum(
        jnp.dot(cast(h1), cast(w2), preferred_element_type=jnp.float32) + b2, 0.0)
    return jnp.sum(h2 * w3, axis=-1, keepdims=True) + b3


if __name__ == "__main__":
    key = jax.random.PRNGKey(0)
    k_params, k_state = jax.random.split(key)

    batch = 8
    input_dim = 8          # e.g. an 8-dimensional observation vector
    fc1_dims = 256
    fc2_dims = 256

    params = init_params(k_params, input_dim, fc1_dims, fc2_dims)
    state = jax.random.normal(k_state, (batch, input_dim), jnp.float32)

    value = critic_forward(state, params)
    value = jax.block_until_ready(value)

    # Compare against a reference that applies the same bf16 matmul casts (f32 accumulation),
    # plus a looser check against the full-f32 reference.
    ref_bf16 = critic_reference(state, params, bf16_matmuls=True)
    ref_f32 = critic_reference(state, params, bf16_matmuls=False)

    assert value.shape == (batch, 1), value.shape
    assert jnp.allclose(value, ref_bf16, atol=1e-2, rtol=1e-2), (value, ref_bf16)
    assert jnp.allclose(value, ref_f32, atol=5e-2, rtol=5e-2), (value, ref_f32)

    # TODO(synk): optimizer (Adam), checkpoint save/load and device placement from the torch
    # module are training/IO concerns, not part of the forward pass, and are not ported.

    print("KERNEL_OK")
</pallas_src>

<mosaic_0001>
module attributes {stable_mosaic.version = 11 : i64} {
  func.func @_critic_kernel(%arg0: i32, %arg1: memref<256x8xf32, #tpu.memory_space<vmem>>, %arg2: memref<8x256xf32, #tpu.memory_space<vmem>>, %arg3: memref<1x256xf32, #tpu.memory_space<vmem>>, %arg4: memref<256x256xf32, #tpu.memory_space<vmem>>, %arg5: memref<1x256xf32, #tpu.memory_space<vmem>>, %arg6: memref<1x256xf32, #tpu.memory_space<vmem>>, %arg7: memref<1x1xf32, #tpu.memory_space<vmem>>, %arg8: memref<256x1xf32, #tpu.memory_space<vmem>>) attributes {dimension_semantics = [#tpu.dimension_semantics<parallel>], iteration_bounds = array<i64: 1>, scalar_prefetch = 0 : i64, scratch_operands = 0 : i64, tpu.core_type = #tpu.core_type<tc>, window_params = [{transform_indices = @transform_0, window_bounds = array<i64: 256, 8>}, {pipeline_mode = #tpu.pipeline_mode<synchronous>, transform_indices = @transform_1, window_bounds = array<i64: 8, 256>}, {pipeline_mode = #tpu.pipeline_mode<synchronous>, transform_indices = @transform_2, window_bounds = array<i64: 1, 256>}, {pipeline_mode = #tpu.pipeline_mode<synchronous>, transform_indices = @transform_3, window_bounds = array<i64: 256, 256>}, {pipeline_mode = #tpu.pipeline_mode<synchronous>, transform_indices = @transform_4, window_bounds = array<i64: 1, 256>}, {pipeline_mode = #tpu.pipeline_mode<synchronous>, transform_indices = @transform_5, window_bounds = array<i64: 1, 256>}, {pipeline_mode = #tpu.pipeline_mode<synchronous>, transform_indices = @transform_6, window_bounds = array<i64: 1, 1>}, {transform_indices = @transform_7, window_bounds = array<i64: 256, 1>}]} {
    %c0 = arith.constant 0 : index
    %c0_0 = arith.constant 0 : index
    %0 = vector.load %arg1[%c0, %c0_0] : memref<256x8xf32, #tpu.memory_space<vmem>>, vector<256x8xf32>
    %1 = arith.truncf %0 : vector<256x8xf32> to vector<256x8xbf16>
    %c0_1 = arith.constant 0 : index
    %c0_2 = arith.constant 0 : index
    %2 = vector.load %arg2[%c0_1, %c0_2] : memref<8x256xf32, #tpu.memory_space<vmem>>, vector<8x256xf32>
    %3 = arith.truncf %2 : vector<8x256xf32> to vector<8x256xbf16>
    %cst = arith.constant dense<0.000000e+00> : vector<256x256xf32>
    %4 = tpu.matmul %1, %3, %cst {dimension_numbers = #tpu.dot_dimension_numbers<[1], [0], [0], [1], [0, 0, 1, 1], [], []>} : vector<256x8xbf16>, vector<8x256xbf16>, vector<256x256xf32> -> vector<256x256xf32>
    %c0_3 = arith.constant 0 : index
    %c0_4 = arith.constant 0 : index
    %5 = vector.load %arg3[%c0_3, %c0_4] : memref<1x256xf32, #tpu.memory_space<vmem>>, vector<1x256xf32>
    %6 = vector.broadcast %5 : vector<1x256xf32> to vector<256x256xf32>
    %7 = arith.addf %4, %6 : vector<256x256xf32>
    %cst_5 = arith.constant 0.000000e+00 : f32
    %8 = vector.broadcast %cst_5 : f32 to vector<256x256xf32>
    %9 = arith.maximumf %7, %8 : vector<256x256xf32>
    %10 = arith.truncf %9 : vector<256x256xf32> to vector<256x256xbf16>
    %c0_6 = arith.constant 0 : index
    %c0_7 = arith.constant 0 : index
    %11 = vector.load %arg4[%c0_6, %c0_7] : memref<256x256xf32, #tpu.memory_space<vmem>>, vector<256x256xf32>
    %12 = arith.truncf %11 : vector<256x256xf32> to vector<256x256xbf16>
    %cst_8 = arith.constant dense<0.000000e+00> : vector<256x256xf32>
    %13 = tpu.matmul %10, %12, %cst_8 {dimension_numbers = #tpu.dot_dimension_numbers<[1], [0], [0], [1], [0, 0, 1, 1], [], []>} : vector<256x256xbf16>, vector<256x256xbf16>, vector<256x256xf32> -> vector<256x256xf32>
    %c0_9 = arith.constant 0 : index
    %c0_10 = arith.constant 0 : index
    %14 = vector.load %arg5[%c0_9, %c0_10] : memref<1x256xf32, #tpu.memory_space<vmem>>, vector<1x256xf32>
    %15 = vector.broadcast %14 : vector<1x256xf32> to vector<256x256xf32>
    %16 = arith.addf %13, %15 : vector<256x256xf32>
    %cst_11 = arith.constant 0.000000e+00 : f32
    %17 = vector.broadcast %cst_11 : f32 to vector<256x256xf32>
    %18 = arith.maximumf %16, %17 : vector<256x256xf32>
    %c0_12 = arith.constant 0 : index
    %c0_13 = arith.constant 0 : index
    %19 = vector.load %arg6[%c0_12, %c0_13] : memref<1x256xf32, #tpu.memory_space<vmem>>, vector<1x256xf32>
    %20 = vector.broadcast %19 : vector<1x256xf32> to vector<256x256xf32>
    %21 = arith.mulf %18, %20 : vector<256x256xf32>
    %cst_14 = arith.constant dense<0.000000e+00> : vector<256xf32>
    %22 = vector.multi_reduction <add>, %21, %cst_14 [1] : vector<256x256xf32> to vector<256xf32>
    %23 = vector.shape_cast %22 : vector<256xf32> to vector<256x1xf32>
    %c0_15 = arith.constant 0 : index
    %c0_16 = arith.constant 0 : index
    %24 = vector.load %arg7[%c0_15, %c0_16] : memref<1x1xf32, #tpu.memory_space<vmem>>, vector<1x1xf32>
    %25 = vector.broadcast %24 : vector<1x1xf32> to vector<256x1xf32>
    %26 = arith.addf %23, %25 : vector<256x1xf32>
    %c0_17 = arith.constant 0 : index
    %c0_18 = arith.constant 0 : index
    %27 = vector.load %arg8[%c0_17, %c0_18] : memref<256x1xf32, #tpu.memory_space<vmem>>, vector<256x1xf32>
    tpu.vector_store %arg8[%c0_17, %c0_18], %26 {strides = array<i32>} : memref<256x1xf32, #tpu.memory_space<vmem>>, vector<256x1xf32>,
    return
  }
  func.func @transform_0(%arg0: i32) -> (i32, i32) {
    %c0_i32 = arith.constant 0 : i32
    %c0_i32_0 = arith.constant 0 : i32
    return %arg0, %c0_i32 : i32, i32
  }
  func.func @transform_1(%arg0: i32) -> (i32, i32) {
    %c0_i32 = arith.constant 0 : i32
    %c0_i32_0 = arith.constant 0 : i32
    %c0_i32_1 = arith.constant 0 : i32
    return %c0_i32, %c0_i32_0 : i32, i32
  }
  func.func @transform_2(%arg0: i32) -> (i32, i32) {
    %c0_i32 = arith.constant 0 : i32
    %c0_i32_0 = arith.constant 0 : i32
    %c0_i32_1 = arith.constant 0 : i32
    return %c0_i32, %c0_i32_0 : i32, i32
  }
  func.func @transform_3(%arg0: i32) -> (i32, i32) {
    %c0_i32 = arith.constant 0 : i32
    %c0_i32_0 = arith.constant 0 : i32
    %c0_i32_1 = arith.constant 0 : i32
    return %c0_i32, %c0_i32_0 : i32, i32
  }
  func.func @transform_4(%arg0: i32) -> (i32, i32) {
    %c0_i32 = arith.constant 0 : i32
    %c0_i32_0 = arith.constant 0 : i32
    %c0_i32_1 = arith.constant 0 : i32
    return %c0_i32, %c0_i32_0 : i32, i32
  }
  func.func @transform_5(%arg0: i32) -> (i32, i32) {
    %c0_i32 = arith.constant 0 : i32
    %c0_i32_0 = arith.constant 0 : i32
    %c0_i32_1 = arith.constant 0 : i32
    return %c0_i32, %c0_i32_0 : i32, i32
  }
  func.func @transform_6(%arg0: i32) -> (i32, i32) {
    %c0_i32 = arith.constant 0 : i32
    %c0_i32_0 = arith.constant 0 : i32
    %c0_i32_1 = arith.constant 0 : i32
    return %c0_i32, %c0_i32_0 : i32, i32
  }
  func.func @transform_7(%arg0: i32) -> (i32, i32) {
    %c0_i32 = arith.constant 0 : i32
    %c0_i32_0 = arith.constant 0 : i32
    return %arg0, %c0_i32 : i32, i32
  }
}

</mosaic_0001>

<bundles_post_ra>
// kernel: tpu_custom_call.1
= control target key start
LH: loop header
LB: loop body
LE: loop exit
PB: predicated region body
PF: predicated region fallthrough
CT: control target
= control target key end

     0   :  { %s1722_s0 = inlined_call_operand.vmem [shape: f32[256,8], index: 0, kind: input, shape index: {}]   ;;  %s1723_s1 = inlined_call_operand.vmem [shape: f32[8,256], index: 1, kind: input, shape index: {}]   ;;  %s1724_s2 = inlined_call_operand.vmem [shape: f32[1,256], index: 2, kind: input, shape index: {}]   ;;  %s1725_s3 = inlined_call_operand.hbm [shape: f32[256,256], index: 3, kind: input, shape index: {}]   ;;  %s1726_s4 = inlined_call_operand.vmem [shape: f32[1,256], index: 4, kind: input, shape index: {}]   ;;  %s1727_s5 = inlined_call_operand.vmem [shape: f32[1,256], index: 5, kind: input, shape index: {}]   ;;  %s1728_s6 = inlined_call_operand.<no memory space> [shape: f32[1,1], index: 6, kind: input, shape index: {}]   ;;  %s1729_s7 = inlined_call_operand.vmem [shape: f32[256,1], index: 7, kind: output, shape index: {}]  }
   0x1   :  { %v12_v0 = vstv %s1728_s6 }
   0x2   :  { %13 = vst [vmem:[#allocation2] sm:$0x1] %v12_v0 }
   0x3   :  { %14 = vsyncpa [#allocation4], 0  ;;  %s1144_s26 = smov [#allocation3]   ;;  %s1120_s30 = scalar_lea.hbm %s1725_s3, 8192 }
   0x4   :  { %s26_s27 = sshll.u32 %s1144_s26, 4  ;;  %p1121_p0 = scmp.ne.s32.totalorder %s1725_s3, %s1120_s30  ;;  %s27_s27 = int_to_ptr.vmem [resolvable:$true] %s26_s27 }
   0x5   :  { %p1124_p1 = scmp.lt.u32.totalorder %s1120_s30, %s1725_s3 }
   0x7   :  { %p1126_p2 = pnand %p1124_p1, %p1121_p0 }
   0x9   :  { %1129 = shalt.err (!%p1126_p2)
}
   0xa   :  { %s1130_s6 = scalar_lea.vmem %s27_s27, 8192  ;;  %p1135_p4 = scmp.lt.s32.totalorder %s27_s27, %s27_s27 }
   0xb   :  { %p1131_p3 = scmp.ne.s32.totalorder %s27_s27, %s1130_s6  ;;  %p1136_p5 = scmp.lt.s32.totalorder %s1130_s6, %s1130_s6 }
   0xd   :  { %p1137_p6 = por %p1136_p5, %p1135_p4 }
   0xf   :  { %p1138_p7 = pnand %p1137_p6, %p1131_p3 }
  0x11   :  { %1141 = shalt.err (!%p1138_p7)
}
  0x12   :  { %s1145_s12 = smov 256   ;;  %s1146_s13 = smov 16  }
  0x13   :  { %32 = dma.hbm_to_vmem [thread:$0]  %s1725_s3, 8192, %s27_s27, [#allocation4], %s1145_s12, %s1145_s12, %s1146_s13  }
  0x14   :  { %1142 = dma.done.wait [#allocation4], 8192  }
  0x15   :  { %1143 = vsyncadd [#allocation4], 4294959104  ;;  %v1147_v1 = vmov 0   ;;  %v92_v2 = vld [vmem:[%s1723_s1 + $0x8] sm:$0xff]  ;;  %vm156_vm0 = vcmask 1043456   ;;  %v91_v3 = vld [vmem:[%s1723_s1] sm:$0xff] }
  0x16   :  { %195 = vmatprep.mubr.bf16.mxu0 %v1147_v1  ;;  %v43_v4 = vld [vmem:[%s1722_s0] sm:$0xff]  ;;  %v94_v5 = vpack.c.bf16 %v92_v2, %v92_v2  ;;  %v93_v6 = vpack.c.bf16 %v91_v3, %v91_v3  ;;  %v44_v7 = vld [vmem:[%s1722_s0 + $0x8] sm:$0xff]  ;;  %vm107_vm1 = vcmask 64512   ;;  %v45_v10 = vld [vmem:[%s1722_s0 + $0x10] sm:$0xff]  ;;  %vm1028_vm2 = vcmask 7168  }
  0x17   :  { %v75_v9 = vpack.c.bf16 %v44_v7, %v43_v4  ;;  %v46_v11 = vld [vmem:[%s1722_s0 + $0x18] sm:$0xff]  ;;  %v453_v13 = vld [vmem:[#allocation3 + $0x8] sm:$0xff]  ;;  %v452_v16 = vld [vmem:[#allocation3] sm:$0xff] }
  0x18   :  { %1066 = vmatprep.subr.msk.bf16.mxu0 %vm156_vm0, %v94_v5  ;;  %v158_v8 = vsel %vm156_vm0, %v93_v6, 0  ;;  %v76_v12 = vpack.c.bf16 %v46_v11, %v45_v10  ;;  %v455_v14 = vld [vmem:[#allocation3 + $0x18] sm:$0xff]  ;;  %v454_v17 = vld [vmem:[#allocation3 + $0x10] sm:$0xff]  ;;  %v457_v18 = vld [vmem:[#allocation3 + $0x28] sm:$0xff] }
  0x19   :  { %164 = vmatpush1.bf16.msra.mxu0 %v158_v8  ;;  %v517_v15 = vpack.c.bf16 %v455_v14, %v453_v13  ;;  %v516_v19 = vpack.c.bf16 %v454_v17, %v452_v16  ;;  %v459_v20 = vld [vmem:[#allocation3 + $0x38] sm:$0xff]  ;;  %v456_v21 = vld [vmem:[#allocation3 + $0x20] sm:$0xff]  ;;  %v458_v22 = vld [vmem:[#allocation3 + $0x30] sm:$0xff] }
  0x1a   :  { %v519_v23 = vpack.c.bf16 %v459_v20, %v457_v18  ;;  %v461_v24 = vld [vmem:[#allocation3 + $0x48] sm:$0xff]  ;;  %v463_v25 = vld [vmem:[#allocation3 + $0x58] sm:$0xff]  ;;  %v518_v28 = vpack.c.bf16 %v458_v22, %v456_v21  ;;  %v460_v30 = vld [vmem:[#allocation3 + $0x40] sm:$0xff] }
  0x1b   :  { %560 = vmatprep.subr.bf16.mxu0 %v517_v15  ;;  %1084 = vmatprep.subr.bf16.mxu1 %v517_v15  ;;  %v47_v26 = vld [vmem:[%s1722_s0 + $0x20] sm:$0xff]  ;;  %v48_v27 = vld [vmem:[%s1722_s0 + $0x28] sm:$0xff]  ;;  %v521_v29 = vpack.c.bf16 %v463_v25, %v461_v24  ;;  %v462_v31 = vld [vmem:[#allocation3 + $0x50] sm:$0xff] }
  0x1c   :  { %1067 = vmatmul.mubr.msk.bf16.vlgmr.msra.gmra.mrb[0].mxu0 %vm107_vm1, %v75_v9  ;;  %1100 = vmatpush1.bf16.msra.mxu1 %v516_v19  ;;  %v465_v32 = vld [vmem:[#allocation3 + $0x68] sm:$0xff]  ;;  %v467_v33 = vld [vmem:[#allocation3 + $0x78] sm:$0xff]  ;;  %v77_v34 = vpack.c.bf16 %v48_v27, %v47_v26  ;;  %v520_v35 = vpack.c.bf16 %v462_v31, %v460_v30  ;;  %v464_v37 = vld [vmem:[#allocation3 + $0x60] sm:$0xff] }
  0x1d   :  { %205 = vmatprep.mubr.bf16.mxu0 %v1147_v1  ;;  %561 = vmatpush1.bf16.msra.mxu0 %v516_v19  ;;  %v523_v36 = vpack.c.bf16 %v467_v33, %v465_v32  ;;  %v466_v38 = vld [vmem:[#allocation3 + $0x70] sm:$0xff]  ;;  %v469_v39 = vld [vmem:[#allocation3 + $0x88] sm:$0xff]  ;;  %v471_v40 = vld [vmem:[#allocation3 + $0x98] sm:$0xff] }
  0x1e   :  { %562 = vmatprep.subr.bf16.mxu0 %v519_v23  ;;  %1085 = vmatprep.subr.bf16.mxu1 %v519_v23  ;;  %v49_v41 = vld [vmem:[%s1722_s0 + $0x30] sm:$0xff]  ;;  %v50_v42 = vld [vmem:[%s1722_s0 + $0x38] sm:$0xff]  ;;  %v522_v43 = vpack.c.bf16 %v466_v38, %v464_v37  ;;  %v525_v44 = vpack.c.bf16 %v471_v40, %v469_v39  ;;  %v468_v45 = vld [vmem:[#allocation3 + $0x80] sm:$0xff] }
  0x1f   :  { %v470_v46 = vld [vmem:[#allocation3 + $0x90] sm:$0xff]  ;;  %v473_v47 = vld [vmem:[#allocation3 + $0xa8] sm:$0xff]  ;;  %v475_v48 = vld [vmem:[#allocation3 + $0xb8] sm:$0xff]  ;;  %v78_v49 = vpack.c.bf16 %v50_v42, %v49_v41 }
  0x20   :  { %1101 = vmatpush1.bf16.msra.mxu1 %v518_v28  ;;  %v524_v50 = vpack.c.bf16 %v470_v46, %v468_v45  ;;  %v527_v51 = vpack.c.bf16 %v475_v48, %v473_v47  ;;  %v472_v52 = vld [vmem:[#allocation3 + $0xa0] sm:$0xff]  ;;  %v474_v53 = vld [vmem:[#allocation3 + $0xb0] sm:$0xff]  ;;  %v477_v54 = vld [vmem:[#allocation3 + $0xc8] sm:$0xff] }
  0x21   :  { %563 = vmatpush1.bf16.msra.mxu0 %v518_v28  ;;  %1086 = vmatprep.subr.bf16.mxu1 %v521_v29  ;;  %v479_v55 = vld [vmem:[#allocation3 + $0xd8] sm:$0xff]  ;;  %v52_v57 = vld [vmem:[%s1722_s0 + $0x48] sm:$0xff]  ;;  %v526_v58 = vpack.c.bf16 %v474_v53, %v472_v52  ;;  %v478_v61 = vld [vmem:[#allocation3 + $0xd0] sm:$0xff] }
  0x22   :  { %564 = vmatprep.subr.bf16.mxu0 %v521_v29  ;;  %v51_v56 = vld [vmem:[%s1722_s0 + $0x40] sm:$0xff]  ;;  %v529_v59 = vpack.c.bf16 %v479_v55, %v477_v54  ;;  %v481_v62 = vld [vmem:[#allocation3 + $0xe8] sm:$0xff]  ;;  %v482_v5 = vld [vmem:[#allocation3 + $0xf0] sm:$0xff] }
  0x23   :  { %v476_v60 = vld [vmem:[#allocation3 + $0xc0] sm:$0xff]  ;;  %v483_v63 = vld [vmem:[#allocation3 + $0xf8] sm:$0xff]  ;;  %v79_v0 = vpack.c.bf16 %v52_v57, %v51_v56  ;;  %v485_v6 = vld [vmem:[#allocation3 + $0x108] sm:$0xff] }
  0x24   :  { %1068 = vmatmul.mubr.msk.bf16.gmra.mrb[4].mxu0 %vm107_vm1, %v76_v12  ;;  %1102 = vmatpush1.bf16.msra.mxu1 %v520_v35  ;;  %v528_v2 = vpack.c.bf16 %v478_v61, %v476_v60  ;;  %v531_v3 = vpack.c.bf16 %v483_v63, %v481_v62  ;;  %v480_v4 = vld [vmem:[#allocation3 + $0xe0] sm:$0xff]  ;;  %v487_v7 = vld [vmem:[#allocation3 + $0x118] sm:$0xff]  ;;  %v53_v8 = vld [vmem:[%s1722_s0 + $0x50] sm:$0xff] }
  0x25   :  { %215 = vmatprep.mubr.bf16.mxu0 %v1147_v1  ;;  %565 = vmatpush1.bf16.msra.mxu0 %v520_v35  ;;  %v54_v9 = vld [vmem:[%s1722_s0 + $0x58] sm:$0xff]  ;;  %v530_v10 = vpack.c.bf16 %v482_v5, %v480_v4  ;;  %v533_v11 = vpack.c.bf16 %v487_v7, %v485_v6  ;;  %v484_v12 = vld [vmem:[#allocation3 + $0x100] sm:$0xff]  ;;  %v489_v14 = vld [vmem:[#allocation3 + $0x128] sm:$0xff] }
  0x26   :  { %566 = vmatprep.subr.bf16.mxu0 %v523_v36  ;;  %1087 = vmatprep.subr.bf16.mxu1 %v523_v36  ;;  %v486_v13 = vld [vmem:[#allocation3 + $0x110] sm:$0xff]  ;;  %v491_v15 = vld [vmem:[#allocation3 + $0x138] sm:$0xff]  ;;  %v80_v16 = vpack.c.bf16 %v54_v9, %v53_v8  ;;  %v488_v19 = vld [vmem:[#allocation3 + $0x120] sm:$0xff] }
  0x27   :  { %v532_v17 = vpack.c.bf16 %v486_v13, %v484_v12  ;;  %v535_v18 = vpack.c.bf16 %v491_v15, %v489_v14  ;;  %v490_v20 = vld [vmem:[#allocation3 + $0x130] sm:$0xff]  ;;  %v493_v21 = vld [vmem:[#allocation3 + $0x148] sm:$0xff]  ;;  %v495_v22 = vld [vmem:[#allocation3 + $0x158] sm:$0xff] }
  0x28   :  { %1103 = vmatpush1.bf16.msra.mxu1 %v522_v43  ;;  %v55_v23 = vld [vmem:[%s1722_s0 + $0x60] sm:$0xff]  ;;  %v56_v24 = vld [vmem:[%s1722_s0 + $0x68] sm:$0xff]  ;;  %v534_v25 = vpack.c.bf16 %v490_v20, %v488_v19  ;;  %v537_v26 = vpack.c.bf16 %v495_v22, %v493_v21  ;;  %v494_v28 = vld [vmem:[#allocation3 + $0x150] sm:$0xff] }
  0x29   :  { %567 = vmatpush1.bf16.msra.mxu0 %v522_v43  ;;  %1088 = vmatprep.subr.bf16.mxu1 %v525_v44  ;;  %v492_v27 = vld [vmem:[#allocation3 + $0x140] sm:$0xff]  ;;  %v497_v29 = vld [vmem:[#allocation3 + $0x168] sm:$0xff]  ;;  %v499_v30 = vld [vmem:[#allocation3 + $0x178] sm:$0xff]  ;;  %v81_v31 = vpack.c.bf16 %v56_v24, %v55_v23 }
  0x2a   :  { %568 = vmatprep.subr.bf16.mxu0 %v525_v44  ;;  %v536_v32 = vpack.c.bf16 %v494_v28, %v492_v27  ;;  %v539_v33 = vpack.c.bf16 %v499_v30, %v497_v29  ;;  %v498_v35 = vld [vmem:[#allocation3 + $0x170] sm:$0xff]  ;;  %v501_v36 = vld [vmem:[#allocation3 + $0x188] sm:$0xff]  ;;  %v503_v37 = vld [vmem:[#allocation3 + $0x198] sm:$0xff] }
  0x2b   :  { %v57_v38 = vld [vmem:[%s1722_s0 + $0x70] sm:$0xff]  ;;  %v58_v39 = vld [vmem:[%s1722_s0 + $0x78] sm:$0xff]  ;;  %v541_v41 = vpack.c.bf16 %v503_v37, %v501_v36  ;;  %v500_v42 = vld [vmem:[#allocation3 + $0x180] sm:$0xff] }
  0x2c   :  { %1069 = vmatmul.mubr.msk.bf16.gmra.mrb[8].mxu0 %vm107_vm1, %v77_v34  ;;  %1104 = vmatpush1.bf16.msra.mxu1 %v524_v50  ;;  %v496_v34 = vld [vmem:[#allocation3 + $0x160] sm:$0xff]  ;;  %v502_v43 = vld [vmem:[#allocation3 + $0x190] sm:$0xff]  ;;  %v505_v44 = vld [vmem:[#allocation3 + $0x1a8] sm:$0xff]  ;;  %v82_v46 = vpack.c.bf16 %v58_v39, %v57_v38 }
  0x2d   :  { %225 = vmatprep.mubr.bf16.mxu0 %v1147_v1  ;;  %569 = vmatpush1.bf16.msra.mxu0 %v524_v50  ;;  %v538_v40 = vpack.c.bf16 %v498_v35, %v496_v34  ;;  %v507_v45 = vld [vmem:[#allocation3 + $0x1b8] sm:$0xff]  ;;  %v540_v47 = vpack.c.bf16 %v502_v43, %v500_v42  ;;  %v60_v50 = vld [vmem:[%s1722_s0 + $0x88] sm:$0xff]  ;;  %v61_v52 = vld [vmem:[%s1722_s0 + $0x90] sm:$0xff] }
  0x2e   :  { %570 = vmatprep.subr.bf16.mxu0 %v527_v51  ;;  %1089 = vmatprep.subr.bf16.mxu1 %v527_v51  ;;  %v543_v48 = vpack.c.bf16 %v507_v45, %v505_v44  ;;  %v62_v53 = vld [vmem:[%s1722_s0 + $0x98] sm:$0xff]  ;;  %v63_v55 = vld [vmem:[%s1722_s0 + $0xa0] sm:$0xff]  ;;  %v64_v56 = vld [vmem:[%s1722_s0 + $0xa8] sm:$0xff] }
  0x2f   :  { %v84_v54 = vpack.c.bf16 %v62_v53, %v61_v52  ;;  %v85_v57 = vpack.c.bf16 %v64_v56, %v63_v55  ;;  %v65_v60 = vld [vmem:[%s1722_s0 + $0xb0] sm:$0xff]  ;;  %v66_v61 = vld [vmem:[%s1722_s0 + $0xb8] sm:$0xff]  ;;  %v508_v4 = vld [vmem:[#allocation3 + $0x1c0] sm:$0xff] }
  0x30   :  { %1105 = vmatpush1.bf16.msra.mxu1 %v526_v58  ;;  %v509_v63 = vld [vmem:[#allocation3 + $0x1c8] sm:$0xff]  ;;  %v510_v5 = vld [vmem:[#allocation3 + $0x1d0] sm:$0xff]  ;;  %v515_v8 = vld [vmem:[#allocation3 + $0x1f8] sm:$0xff] }
  0x31   :  { %571 = vmatpush1.bf16.msra.mxu0 %v526_v58  ;;  %1090 = vmatprep.subr.bf16.mxu1 %v529_v59  ;;  %v504_v58 = vld [vmem:[#allocation3 + $0x1a0] sm:$0xff]  ;;  %v544_v6 = vpack.c.bf16 %v510_v5, %v508_v4  ;;  %v513_v7 = vld [vmem:[#allocation3 + $0x1e8] sm:$0xff]  ;;  %v74_v23 = vld [vmem:[%s1722_s0 + $0xf8] sm:$0xff] }
  0x32   :  { %572 = vmatprep.subr.bf16.mxu0 %v529_v59  ;;  %v506_v59 = vld [vmem:[#allocation3 + $0x1b0] sm:$0xff]  ;;  %v547_v9 = vpack.c.bf16 %v515_v8, %v513_v7  ;;  %v67_v12 = vld [vmem:[%s1722_s0 + $0xc0] sm:$0xff]  ;;  %v68_v13 = vld [vmem:[%s1722_s0 + $0xc8] sm:$0xff] }
  0x33   :  { %v542_v62 = vpack.c.bf16 %v506_v59, %v504_v58  ;;  %v87_v15 = vpack.c.bf16 %v68_v13, %v67_v12  ;;  %v71_v19 = vld [vmem:[%s1722_s0 + $0xe0] sm:$0xff]  ;;  %v72_v20 = vld [vmem:[%s1722_s0 + $0xe8] sm:$0xff]  ;;  %v73_v22 = vld [vmem:[%s1722_s0 + $0xf0] sm:$0xff] }
  0x34   :  { %1070 = vmatmul.mubr.msk.bf16.gmra.mrb[12].mxu0 %vm107_vm1, %v78_v49  ;;  %1106 = vmatpush1.bf16.msra.mxu1 %v528_v2  ;;  %v59_v49 = vld [vmem:[%s1722_s0 + $0x80] sm:$0xff]  ;;  %v89_v21 = vpack.c.bf16 %v72_v20, %v71_v19  ;;  %v90_v24 = vpack.c.bf16 %v74_v23, %v73_v22 }
  0x35   :  { %235 = vmatprep.mubr.bf16.mxu0 %v1147_v1  ;;  %573 = vmatpush1.bf16.msra.mxu0 %v528_v2  ;;  %v83_v51 = vpack.c.bf16 %v60_v50, %v59_v49  ;;  %v86_v2 = vpack.c.bf16 %v66_v61, %v65_v60  ;;  %v95_v28 = vld [vmem:[%s1724_s2] sm:$0x3] }
  0x36   :  { %574 = vmatprep.subr.bf16.mxu0 %v531_v3  ;;  %1091 = vmatprep.subr.bf16.mxu1 %v531_v3 }
  0x38   :  { %1107 = vmatpush1.bf16.msra.mxu1 %v530_v10 }
  0x39   :  { %575 = vmatpush1.bf16.msra.mxu0 %v530_v10  ;;  %1092 = vmatprep.subr.bf16.mxu1 %v533_v11  ;;  %v512_v10 = vld [vmem:[#allocation3 + $0x1e0] sm:$0xff] }
  0x3a   :  { %576 = vmatprep.subr.bf16.mxu0 %v533_v11  ;;  %v514_v11 = vld [vmem:[#allocation3 + $0x1f0] sm:$0xff] }
  0x3b   :  { %v546_v14 = vpack.c.bf16 %v514_v11, %v512_v10 }
  0x3c   :  { %1071 = vmatmul.mubr.msk.bf16.gmra.mrb[16].mxu0 %vm107_vm1, %v79_v0  ;;  %1108 = vmatpush1.bf16.msra.mxu1 %v532_v17  ;;  %v511_v0 = vld [vmem:[#allocation3 + $0x1d8] sm:$0xff] }
  0x3d   :  { %245 = vmatprep.mubr.bf16.mxu0 %v1147_v1  ;;  %577 = vmatpush1.bf16.msra.mxu0 %v532_v17  ;;  %v545_v3 = vpack.c.bf16 %v511_v0, %v509_v63  ;;  %v70_v17 = vld [vmem:[%s1722_s0 + $0xd8] sm:$0xff] }
  0x3e   :  { %578 = vmatprep.subr.bf16.mxu0 %v535_v18  ;;  %1093 = vmatprep.subr.bf16.mxu1 %v535_v18 }
  0x40   :  { %1109 = vmatpush1.bf16.msra.mxu1 %v534_v25 }
  0x41   :  { %579 = vmatpush1.bf16.msra.mxu0 %v534_v25  ;;  %1094 = vmatprep.subr.bf16.mxu1 %v537_v26  ;;  %v97_v25 = vlaneseq }
  0x42   :  { %580 = vmatprep.subr.bf16.mxu0 %v537_v26 }
  0x43   :  { %v98_v26 = vshrl.u32 %v97_v25, 7 }
  0x44   :  { %1072 = vmatmul.mubr.msk.bf16.gmra.mrb[20].mxu0 %vm107_vm1, %v80_v16  ;;  %1110 = vmatpush1.bf16.msra.mxu1 %v536_v32  ;;  %v69_v16 = vld [vmem:[%s1722_s0 + $0xd0] sm:$0xff] }
  0x45   :  { %255 = vmatprep.mubr.bf16.mxu0 %v1147_v1  ;;  %581 = vmatpush1.bf16.msra.mxu0 %v536_v32  ;;  %v88_v18 = vpack.c.bf16 %v70_v17, %v69_v16  ;;  %v1337_v27 = vsub.s32 0, %v98_v26 }
  0x46   :  { %582 = vmatprep.subr.bf16.mxu0 %v539_v33  ;;  %1095 = vmatprep.subr.bf16.mxu1 %v539_v33 }
  0x47   :  { %v1345_v29 = vrot.slane %v95_v28, %v1337_v27 }
  0x48   :  { %1111 = vmatpush1.bf16.msra.mxu1 %v538_v40 }
  0x49   :  { %583 = vmatpush1.bf16.msra.mxu0 %v538_v40  ;;  %1096 = vmatprep.subr.bf16.mxu1 %v541_v41 }
  0x4a   :  { %584 = vmatprep.subr.bf16.mxu0 %v541_v41 }
  0x4c   :  { %1073 = vmatmul.mubr.msk.bf16.gmra.mrb[24].mxu0 %vm107_vm1, %v81_v31  ;;  %1112 = vmatpush1.bf16.msra.mxu1 %v540_v47 }
  0x4d   :  { %265 = vmatprep.mubr.bf16.mxu0 %v1147_v1  ;;  %585 = vmatpush1.bf16.msra.mxu0 %v540_v47 }
  0x4e   :  { %586 = vmatprep.subr.bf16.mxu0 %v543_v48  ;;  %1097 = vmatprep.subr.bf16.mxu1 %v543_v48 }
  0x50   :  { %1113 = vmatpush1.bf16.msra.mxu1 %v542_v62 }
  0x51   :  { %587 = vmatpush1.bf16.msra.mxu0 %v542_v62  ;;  %1098 = vmatprep.subr.bf16.mxu1 %v545_v3 }
  0x52   :  { %588 = vmatprep.subr.bf16.mxu0 %v545_v3 }
  0x54   :  { %1074 = vmatmul.mubr.msk.bf16.gmra.mrb[28].mxu0 %vm107_vm1, %v82_v46  ;;  %1114 = vmatpush1.bf16.msra.mxu1 %v544_v6 }
  0x55   :  { %275 = vmatprep.mubr.bf16.mxu0 %v1147_v1  ;;  %589 = vmatpush1.bf16.msra.mxu0 %v544_v6 }
  0x56   :  { %590 = vmatprep.subr.bf16.mxu0 %v547_v9  ;;  %1099 = vmatprep.subr.bf16.mxu1 %v547_v9 }
  0x58   :  { %1115 = vmatpush1.bf16.msra.mxu1 %v546_v14 }
  0x59   :  { %591 = vmatpush1.bf16.msra.mxu0 %v546_v14 }
  0x5c   :  { %1075 = vmatmul.mubr.msk.bf16.gmra.mrb[32].mxu0 %vm107_vm1, %v83_v51 }
  0x5d   :  { %285 = vmatprep.mubr.bf16.mxu0 %v1147_v1 }
  0x64   :  { %1076 = vmatmul.mubr.msk.bf16.gmra.mrb[36].mxu0 %vm107_vm1, %v84_v54 }
  0x65   :  { %295 = vmatprep.mubr.bf16.mxu0 %v1147_v1 }
  0x6c   :  { %1077 = vmatmul.mubr.msk.bf16.gmra.mrb[40].mxu0 %vm107_vm1, %v85_v57 }
  0x6d   :  { %305 = vmatprep.mubr.bf16.mxu0 %v1147_v1 }
  0x74   :  { %1078 = vmatmul.mubr.msk.bf16.gmra.mrb[44].mxu0 %vm107_vm1, %v86_v2 }
  0x75   :  { %315 = vmatprep.mubr.bf16.mxu0 %v1147_v1 }
  0x7c   :  { %1079 = vmatmul.mubr.msk.bf16.gmra.mrb[48].mxu0 %vm107_vm1, %v87_v15 }
  0x7d   :  { %325 = vmatprep.mubr.bf16.mxu0 %v1147_v1 }
  0x84   :  { %1080 = vmatmul.mubr.msk.bf16.gmra.mrb[52].mxu0 %vm107_vm1, %v88_v18 }
  0x85   :  { %335 = vmatprep.mubr.bf16.mxu0 %v1147_v1 }
  0x8c   :  { %1081 = vmatmul.mubr.msk.bf16.gmra.mrb[56].mxu0 %vm107_vm1, %v89_v21 }
  0x8d   :  { %345 = vmatprep.mubr.bf16.mxu0 %v1147_v1  ;;  %v1342_v1 = vsub.s32 1, %v98_v26 }
  0x8f   :  { %v1348_v30 = vrot.slane %v95_v28, %v1342_v1 }
  0x94   :  { %1082 = vmatmul.mubr.msk.bf16.gmra.mrb[60].mxu0 %vm107_vm1, %v90_v24 }
  0xef   :  { %v197_v31 = vpop.f32.mrb[0].mxu0 }
  0xf0   :  { %v198_v32 = vadd.f32 %v197_v31, %v1345_v29  ;;  %v199_v33 = vpop.f32.mrb[1].mxu0 }
  0xf1   :  { %v200_v34 = vadd.f32 %v199_v33, %v1348_v30  ;;  %v201_v35 = vpop.f32.mrb[2].mxu0 }
  0xf2   :  { %v202_v36 = vadd.f32 %v201_v35, %v1345_v29  ;;  %v203_v37 = vpop.f32.mrb[3].mxu0  ;;  %v356_v39 = vmax.f32 %v198_v32, 0.0 }
  0xf3   :  { %v204_v38 = vadd.f32 %v203_v37, %v1348_v30  ;;  %v357_v41 = vmax.f32 %v200_v34, 0.0 }
  0xf4   :  { %v358_v40 = vmax.f32 %v202_v36, 0.0 }
  0xf5   :  { %v359_v42 = vmax.f32 %v204_v38, 0.0 }
  0xf6   :  { %v420_v43 = vpack.c.bf16 %v358_v40, %v356_v39 }
  0xf7   :  { %v421_v44 = vpack.c.bf16 %v359_v42, %v357_v41  ;;  %v207_v45 = vpop.f32.mrb[4].mxu0 }
  0xf8   :  { %v208_v46 = vadd.f32 %v207_v45, %v1345_v29  ;;  %v209_v47 = vpop.f32.mrb[5].mxu0 }
  0xf9   :  { %v210_v48 = vadd.f32 %v209_v47, %v1348_v30  ;;  %v211_v49 = vpop.f32.mrb[6].mxu0  ;;  %592 = vmatprep.mubr.bf16.mxu0 %v421_v44 }
  0xfa   :  { %v212_v50 = vadd.f32 %v211_v49, %v1345_v29  ;;  %v213_v51 = vpop.f32.mrb[7].mxu0  ;;  %593 = vmatmul.mubr.bf16.vlgmr.msra.gmra.mrb[64].mxu0 %v420_v43  ;;  %v360_v53 = vmax.f32 %v208_v46, 0.0 }
  0xfb   :  { %v214_v52 = vadd.f32 %v213_v51, %v1348_v30  ;;  %v361_v55 = vmax.f32 %v210_v48, 0.0 }
  0xfc   :  { %v362_v54 = vmax.f32 %v212_v50, 0.0 }
  0xfd   :  { %v363_v56 = vmax.f32 %v214_v52, 0.0 }
  0xfe   :  { %v422_v57 = vpack.c.bf16 %v362_v54, %v360_v53 }
  0xff   :  { %v423_v58 = vpack.c.bf16 %v363_v56, %v361_v55  ;;  %v217_v59 = vpop.f32.mrb[8].mxu0 }
 0x100   :  { %v218_v60 = vadd.f32 %v217_v59, %v1345_v29  ;;  %v219_v61 = vpop.f32.mrb[9].mxu0 }
 0x101   :  { %v220_v62 = vadd.f32 %v219_v61, %v1348_v30  ;;  %v221_v63 = vpop.f32.mrb[10].mxu0  ;;  %602 = vmatprep.mubr.bf16.mxu0 %v423_v58 }
 0x102   :  { %v222_v0 = vadd.f32 %v221_v63, %v1345_v29  ;;  %v223_v2 = vpop.f32.mrb[11].mxu0  ;;  %603 = vmatmul.mubr.bf16.gmra.mrb[68].mxu0 %v422_v57  ;;  %v364_v4 = vmax.f32 %v218_v60, 0.0 }
 0x103   :  { %v224_v3 = vadd.f32 %v223_v2, %v1348_v30  ;;  %v365_v6 = vmax.f32 %v220_v62, 0.0 }
 0x104   :  { %v366_v5 = vmax.f32 %v222_v0, 0.0 }
 0x105   :  { %v367_v7 = vmax.f32 %v224_v3, 0.0 }
 0x106   :  { %v424_v8 = vpack.c.bf16 %v366_v5, %v364_v4 }
 0x107   :  { %v425_v9 = vpack.c.bf16 %v367_v7, %v365_v6  ;;  %v227_v10 = vpop.f32.mrb[12].mxu0 }
 0x108   :  { %v228_v11 = vadd.f32 %v227_v10, %v1345_v29  ;;  %v229_v12 = vpop.f32.mrb[13].mxu0 }
 0x109   :  { %v230_v13 = vadd.f32 %v229_v12, %v1348_v30  ;;  %v231_v14 = vpop.f32.mrb[14].mxu0  ;;  %612 = vmatprep.mubr.bf16.mxu0 %v425_v9 }
 0x10a   :  { %v232_v15 = vadd.f32 %v231_v14, %v1345_v29  ;;  %v233_v16 = vpop.f32.mrb[15].mxu0  ;;  %613 = vmatmul.mubr.bf16.gmra.mrb[72].mxu0 %v424_v8  ;;  %v368_v18 = vmax.f32 %v228_v11, 0.0 }
 0x10b   :  { %v234_v17 = vadd.f32 %v233_v16, %v1348_v30  ;;  %v369_v20 = vmax.f32 %v230_v13, 0.0 }
 0x10c   :  { %v370_v19 = vmax.f32 %v232_v15, 0.0 }
 0x10d   :  { %v371_v21 = vmax.f32 %v234_v17, 0.0 }
 0x10e   :  { %v426_v22 = vpack.c.bf16 %v370_v19, %v368_v18 }
 0x10f   :  { %v237_v23 = vpop.f32.mrb[16].mxu0  ;;  %v427_v24 = vpack.c.bf16 %v371_v21, %v369_v20 }
 0x110   :  { %v238_v25 = vadd.f32 %v237_v23, %v1345_v29  ;;  %v239_v26 = vpop.f32.mrb[17].mxu0 }
 0x111   :  { %v240_v28 = vadd.f32 %v239_v26, %v1348_v30  ;;  %v241_v31 = vpop.f32.mrb[18].mxu0  ;;  %622 = vmatprep.mubr.bf16.mxu1 %v427_v24 }
 0x112   :  { %v242_v32 = vadd.f32 %v241_v31, %v1345_v29  ;;  %v243_v33 = vpop.f32.mrb[19].mxu0  ;;  %623 = vmatmul.mubr.bf16.vlgmr.msra.gmra.mrb[0].mxu1 %v426_v22  ;;  %v372_v35 = vmax.f32 %v238_v25, 0.0 }
 0x113   :  { %v244_v34 = vadd.f32 %v243_v33, %v1348_v30  ;;  %v373_v37 = vmax.f32 %v240_v28, 0.0 }
 0x114   :  { %v374_v36 = vmax.f32 %v242_v32, 0.0 }
 0x115   :  { %v375_v38 = vmax.f32 %v244_v34, 0.0 }
 0x116   :  { %v428_v39 = vpack.c.bf16 %v374_v36, %v372_v35 }
 0x117   :  { %v429_v40 = vpack.c.bf16 %v375_v38, %v373_v37  ;;  %v247_v41 = vpop.f32.mrb[20].mxu0 }
 0x118   :  { %v248_v42 = vadd.f32 %v247_v41, %v1345_v29  ;;  %v249_v43 = vpop.f32.mrb[21].mxu0 }
 0x119   :  { %v250_v44 = vadd.f32 %v249_v43, %v1348_v30  ;;  %v251_v45 = vpop.f32.mrb[22].mxu0  ;;  %632 = vmatprep.mubr.bf16.mxu1 %v429_v40 }
 0x11a   :  { %v252_v46 = vadd.f32 %v251_v45, %v1345_v29  ;;  %v253_v47 = vpop.f32.mrb[23].mxu0  ;;  %633 = vmatmul.mubr.bf16.gmra.mrb[4].mxu1 %v428_v39  ;;  %v376_v49 = vmax.f32 %v248_v42, 0.0 }
 0x11b   :  { %v254_v48 = vadd.f32 %v253_v47, %v1348_v30  ;;  %v377_v51 = vmax.f32 %v250_v44, 0.0 }
 0x11c   :  { %v378_v50 = vmax.f32 %v252_v46, 0.0 }
 0x11d   :  { %v379_v52 = vmax.f32 %v254_v48, 0.0 }
 0x11e   :  { %v430_v53 = vpack.c.bf16 %v378_v50, %v376_v49 }
 0x11f   :  { %v431_v54 = vpack.c.bf16 %v379_v52, %v377_v51  ;;  %v257_v55 = vpop.f32.mrb[24].mxu0 }
 0x120   :  { %v258_v56 = vadd.f32 %v257_v55, %v1345_v29  ;;  %v259_v57 = vpop.f32.mrb[25].mxu0 }
 0x121   :  { %v260_v58 = vadd.f32 %v259_v57, %v1348_v30  ;;  %v261_v59 = vpop.f32.mrb[26].mxu0  ;;  %642 = vmatprep.mubr.bf16.mxu1 %v431_v54 }
 0x122   :  { %v262_v60 = vadd.f32 %v261_v59, %v1345_v29  ;;  %v263_v61 = vpop.f32.mrb[27].mxu0  ;;  %643 = vmatmul.mubr.bf16.gmra.mrb[8].mxu1 %v430_v53  ;;  %v380_v63 = vmax.f32 %v258_v56, 0.0 }
 0x123   :  { %v264_v62 = vadd.f32 %v263_v61, %v1348_v30  ;;  %v381_v2 = vmax.f32 %v260_v58, 0.0 }
 0x124   :  { %v382_v0 = vmax.f32 %v262_v60, 0.0 }
 0x125   :  { %v383_v3 = vmax.f32 %v264_v62, 0.0 }
 0x126   :  { %v432_v4 = vpack.c.bf16 %v382_v0, %v380_v63 }
 0x127   :  { %v433_v5 = vpack.c.bf16 %v383_v3, %v381_v2  ;;  %v267_v6 = vpop.f32.mrb[28].mxu0 }
 0x128   :  { %v268_v7 = vadd.f32 %v267_v6, %v1345_v29  ;;  %v269_v8 = vpop.f32.mrb[29].mxu0 }
 0x129   :  { %v270_v9 = vadd.f32 %v269_v8, %v1348_v30  ;;  %v271_v10 = vpop.f32.mrb[30].mxu0  ;;  %652 = vmatprep.mubr.bf16.mxu1 %v433_v5 }
 0x12a   :  { %v272_v11 = vadd.f32 %v271_v10, %v1345_v29  ;;  %v273_v12 = vpop.f32.mrb[31].mxu0  ;;  %653 = vmatmul.mubr.bf16.gmra.mrb[12].mxu1 %v432_v4  ;;  %v384_v14 = vmax.f32 %v268_v7, 0.0 }
 0x12b   :  { %v274_v13 = vadd.f32 %v273_v12, %v1348_v30  ;;  %v385_v16 = vmax.f32 %v270_v9, 0.0 }
 0x12c   :  { %v386_v15 = vmax.f32 %v272_v11, 0.0 }
 0x12d   :  { %v387_v17 = vmax.f32 %v274_v13, 0.0 }
 0x12e   :  { %v434_v18 = vpack.c.bf16 %v386_v15, %v384_v14 }
 0x12f   :  { %v435_v19 = vpack.c.bf16 %v387_v17, %v385_v16  ;;  %v277_v20 = vpop.f32.mrb[32].mxu0 }
 0x130   :  { %v278_v21 = vadd.f32 %v277_v20, %v1345_v29  ;;  %v279_v22 = vpop.f32.mrb[33].mxu0 }
 0x131   :  { %v280_v23 = vadd.f32 %v279_v22, %v1348_v30  ;;  %v281_v24 = vpop.f32.mrb[34].mxu0  ;;  %662 = vmatprep.mubr.bf16.mxu1 %v435_v19 }
 0x132   :  { %v282_v25 = vadd.f32 %v281_v24, %v1345_v29  ;;  %v283_v26 = vpop.f32.mrb[35].mxu0  ;;  %663 = vmatmul.mubr.bf16.gmra.mrb[16].mxu1 %v434_v18  ;;  %v388_v31 = vmax.f32 %v278_v21, 0.0 }
 0x133   :  { %v284_v28 = vadd.f32 %v283_v26, %v1348_v30  ;;  %v389_v33 = vmax.f32 %v280_v23, 0.0 }
 0x134   :  { %v390_v32 = vmax.f32 %v282_v25, 0.0 }
 0x135   :  { %v391_v34 = vmax.f32 %v284_v28, 0.0 }
 0x136   :  { %v436_v35 = vpack.c.bf16 %v390_v32, %v388_v31 }
 0x137   :  { %v437_v36 = vpack.c.bf16 %v391_v34, %v389_v33  ;;  %v287_v37 = vpop.f32.mrb[36].mxu0 }
 0x138   :  { %v288_v38 = vadd.f32 %v287_v37, %v1345_v29  ;;  %v289_v39 = vpop.f32.mrb[37].mxu0 }
 0x139   :  { %v290_v40 = vadd.f32 %v289_v39, %v1348_v30  ;;  %v291_v41 = vpop.f32.mrb[38].mxu0  ;;  %672 = vmatprep.mubr.bf16.mxu1 %v437_v36 }
 0x13a   :  { %v292_v42 = vadd.f32 %v291_v41, %v1345_v29  ;;  %v293_v43 = vpop.f32.mrb[39].mxu0  ;;  %673 = vmatmul.mubr.bf16.gmra.mrb[20].mxu1 %v436_v35  ;;  %v392_v45 = vmax.f32 %v288_v38, 0.0 }
 0x13b   :  { %v294_v44 = vadd.f32 %v293_v43, %v1348_v30  ;;  %v393_v47 = vmax.f32 %v290_v40, 0.0 }
 0x13c   :  { %v394_v46 = vmax.f32 %v292_v42, 0.0 }
 0x13d   :  { %v395_v48 = vmax.f32 %v294_v44, 0.0 }
 0x13e   :  { %v438_v49 = vpack.c.bf16 %v394_v46, %v392_v45 }
 0x13f   :  { %v439_v50 = vpack.c.bf16 %v395_v48, %v393_v47  ;;  %v297_v51 = vpop.f32.mrb[40].mxu0 }
 0x140   :  { %v298_v52 = vadd.f32 %v297_v51, %v1345_v29  ;;  %v299_v53 = vpop.f32.mrb[41].mxu0 }
 0x141   :  { %v300_v54 = vadd.f32 %v299_v53, %v1348_v30  ;;  %v301_v55 = vpop.f32.mrb[42].mxu0  ;;  %682 = vmatprep.mubr.bf16.mxu1 %v439_v50 }
 0x142   :  { %v302_v56 = vadd.f32 %v301_v55, %v1345_v29  ;;  %v303_v57 = vpop.f32.mrb[43].mxu0  ;;  %683 = vmatmul.mubr.bf16.gmra.mrb[24].mxu1 %v438_v49  ;;  %v396_v59 = vmax.f32 %v298_v52, 0.0 }
 0x143   :  { %v304_v58 = vadd.f32 %v303_v57, %v1348_v30  ;;  %v397_v61 = vmax.f32 %v300_v54, 0.0 }
 0x144   :  { %v398_v60 = vmax.f32 %v302_v56, 0.0 }
 0x145   :  { %v399_v62 = vmax.f32 %v304_v58, 0.0 }
 0x146   :  { %v440_v63 = vpack.c.bf16 %v398_v60, %v396_v59 }
 0x147   :  { %v441_v0 = vpack.c.bf16 %v399_v62, %v397_v61  ;;  %v307_v2 = vpop.f32.mrb[44].mxu0 }
 0x148   :  { %v308_v3 = vadd.f32 %v307_v2, %v1345_v29  ;;  %v309_v4 = vpop.f32.mrb[45].mxu0 }
 0x149   :  { %v310_v5 = vadd.f32 %v309_v4, %v1348_v30  ;;  %v311_v6 = vpop.f32.mrb[46].mxu0  ;;  %692 = vmatprep.mubr.bf16.mxu1 %v441_v0 }
 0x14a   :  { %v312_v7 = vadd.f32 %v311_v6, %v1345_v29  ;;  %v313_v8 = vpop.f32.mrb[47].mxu0  ;;  %693 = vmatmul.mubr.bf16.gmra.mrb[28].mxu1 %v440_v63  ;;  %v400_v10 = vmax.f32 %v308_v3, 0.0 }
 0x14b   :  { %v314_v9 = vadd.f32 %v313_v8, %v1348_v30  ;;  %v401_v12 = vmax.f32 %v310_v5, 0.0 }
 0x14c   :  { %v402_v11 = vmax.f32 %v312_v7, 0.0 }
 0x14d   :  { %v403_v13 = vmax.f32 %v314_v9, 0.0 }
 0x14e   :  { %v442_v14 = vpack.c.bf16 %v402_v11, %v400_v10 }
 0x14f   :  { %v443_v15 = vpack.c.bf16 %v403_v13, %v401_v12  ;;  %v317_v16 = vpop.f32.mrb[48].mxu0  ;;  %v548_v12 = vld [vmem:[%s1726_s4] sm:$0x3] }
 0x150   :  { %v318_v17 = vadd.f32 %v317_v16, %v1345_v29  ;;  %v319_v18 = vpop.f32.mrb[49].mxu0  ;;  %v1418_v13 = vrot.slane %v548_v12, %v1337_v27 }
 0x151   :  { %v320_v19 = vadd.f32 %v319_v18, %v1348_v30  ;;  %v321_v20 = vpop.f32.mrb[50].mxu0  ;;  %702 = vmatprep.mubr.bf16.mxu1 %v443_v15 }
 0x152   :  { %v322_v21 = vadd.f32 %v321_v20, %v1345_v29  ;;  %v323_v22 = vpop.f32.mrb[51].mxu0  ;;  %703 = vmatmul.mubr.bf16.gmra.mrb[32].mxu1 %v442_v14  ;;  %v404_v24 = vmax.f32 %v318_v17, 0.0 }
 0x153   :  { %v324_v23 = vadd.f32 %v323_v22, %v1348_v30  ;;  %v405_v26 = vmax.f32 %v320_v19, 0.0 }
 0x154   :  { %v406_v25 = vmax.f32 %v322_v21, 0.0 }
 0x155   :  { %v407_v28 = vmax.f32 %v324_v23, 0.0 }
 0x156   :  { %v444_v31 = vpack.c.bf16 %v406_v25, %v404_v24 }
 0x157   :  { %v445_v32 = vpack.c.bf16 %v407_v28, %v405_v26  ;;  %v327_v33 = vpop.f32.mrb[52].mxu0 }
 0x158   :  { %v328_v34 = vadd.f32 %v327_v33, %v1345_v29  ;;  %v329_v35 = vpop.f32.mrb[53].mxu0 }
 0x159   :  { %v330_v36 = vadd.f32 %v329_v35, %v1348_v30  ;;  %v331_v37 = vpop.f32.mrb[54].mxu0  ;;  %712 = vmatprep.mubr.bf16.mxu1 %v445_v32 }
 0x15a   :  { %v332_v38 = vadd.f32 %v331_v37, %v1345_v29  ;;  %v333_v39 = vpop.f32.mrb[55].mxu0  ;;  %713 = vmatmul.mubr.bf16.gmra.mrb[36].mxu1 %v444_v31  ;;  %v408_v41 = vmax.f32 %v328_v34, 0.0 }
 0x15b   :  { %v334_v40 = vadd.f32 %v333_v39, %v1348_v30  ;;  %v409_v43 = vmax.f32 %v330_v36, 0.0 }
 0x15c   :  { %v410_v42 = vmax.f32 %v332_v38, 0.0 }
 0x15d   :  { %v411_v44 = vmax.f32 %v334_v40, 0.0 }
 0x15e   :  { %v446_v45 = vpack.c.bf16 %v410_v42, %v408_v41 }
 0x15f   :  { %v447_v46 = vpack.c.bf16 %v411_v44, %v409_v43  ;;  %v337_v47 = vpop.f32.mrb[56].mxu0 }
 0x160   :  { %v338_v48 = vadd.f32 %v337_v47, %v1345_v29  ;;  %v339_v49 = vpop.f32.mrb[57].mxu0 }
 0x161   :  { %v340_v50 = vadd.f32 %v339_v49, %v1348_v30  ;;  %v341_v51 = vpop.f32.mrb[58].mxu0  ;;  %722 = vmatprep.mubr.bf16.mxu1 %v447_v46 }
 0x162   :  { %v342_v52 = vadd.f32 %v341_v51, %v1345_v29  ;;  %v343_v53 = vpop.f32.mrb[59].mxu0  ;;  %723 = vmatmul.mubr.bf16.gmra.mrb[40].mxu1 %v446_v45  ;;  %v412_v55 = vmax.f32 %v338_v48, 0.0 }
 0x163   :  { %v344_v54 = vadd.f32 %v343_v53, %v1348_v30  ;;  %v413_v57 = vmax.f32 %v340_v50, 0.0 }
 0x164   :  { %v414_v56 = vmax.f32 %v342_v52, 0.0 }
 0x165   :  { %v415_v58 = vmax.f32 %v344_v54, 0.0 }
 0x166   :  { %v448_v59 = vpack.c.bf16 %v414_v56, %v412_v55 }
 0x167   :  { %v449_v60 = vpack.c.bf16 %v415_v58, %v413_v57  ;;  %v347_v61 = vpop.f32.mrb[60].mxu0 }
 0x168   :  { %v348_v62 = vadd.f32 %v347_v61, %v1345_v29  ;;  %v349_v63 = vpop.f32.mrb[61].mxu0 }
 0x169   :  { %v350_v0 = vadd.f32 %v349_v63, %v1348_v30  ;;  %v351_v2 = vpop.f32.mrb[62].mxu0  ;;  %732 = vmatprep.mubr.bf16.mxu1 %v449_v60 }
 0x16a   :  { %v352_v3 = vadd.f32 %v351_v2, %v1345_v29  ;;  %v353_v4 = vpop.f32.mrb[63].mxu0  ;;  %733 = vmatmul.mubr.bf16.gmra.mrb[44].mxu1 %v448_v59  ;;  %v416_v6 = vmax.f32 %v348_v62, 0.0  ;;  %v1421_v29 = vrot.slane %v548_v12, %v1342_v1 }
 0x16b   :  { %v354_v5 = vadd.f32 %v353_v4, %v1348_v30  ;;  %v417_v8 = vmax.f32 %v350_v0, 0.0  ;;  %v817_v30 = vld [vmem:[%s1727_s5] sm:$0x3] }
 0x16c   :  { %v418_v7 = vmax.f32 %v352_v3, 0.0  ;;  %v1428_v17 = vrot.slane %v817_v30, %v1337_v27  ;;  %v1432_v20 = vrot.slane %v817_v30, %v1342_v1 }
 0x16d   :  { %v419_v9 = vmax.f32 %v354_v5, 0.0 }
 0x16e   :  { %v450_v10 = vpack.c.bf16 %v418_v7, %v416_v6 }
 0x16f   :  { %v451_v11 = vpack.c.bf16 %v419_v9, %v417_v8 }
 0x171   :  { %742 = vmatprep.mubr.bf16.mxu1 %v451_v11 }
 0x172   :  { %743 = vmatmul.mubr.bf16.gmra.mrb[48].mxu1 %v450_v10 }
 0x1cd   :  { %v594_v14 = vpop.f32.mrb[64].mxu0 }
 0x1ce   :  { %v595_v15 = vadd.f32 %v594_v14, %v1418_v13  ;;  %v596_v16 = vpop.f32.mrb[65].mxu0 }
 0x1cf   :  { %v597_v18 = vadd.f32 %v596_v16, %v1421_v29  ;;  %v598_v19 = vpop.f32.mrb[66].mxu0 }
 0x1d0   :  { %v753_v21 = vmax.f32 %v595_v15, 0.0  ;;  %v599_v22 = vadd.f32 %v598_v19, %v1418_v13  ;;  %v600_v23 = vpop.f32.mrb[67].mxu0 }
 0x1d1   :  { %v754_v24 = vmax.f32 %v597_v18, 0.0  ;;  %v601_v25 = vadd.f32 %v600_v23, %v1421_v29 }
 0x1d2   :  { %v755_v26 = vmax.f32 %v599_v22, 0.0  ;;  %v829_v28 = vmul.f32 %v1428_v17, %v753_v21 }
 0x1d3   :  { %v756_v31 = vmax.f32 %v601_v25, 0.0  ;;  %v830_v27 = vmul.f32 %v1432_v20, %v754_v24 }
 0x1d4   :  { %v831_v32 = vmul.f32 %v1428_v17, %v755_v26 }
 0x1d5   :  { %v832_v33 = vmul.f32 %v1432_v20, %v756_v31  ;;  %v604_v34 = vpop.f32.mrb[68].mxu0  ;;  %v893_v1 = vadd.f32 %v830_v27, %v829_v28 }
 0x1d6   :  { %v605_v35 = vadd.f32 %v604_v34, %v1418_v13  ;;  %v606_v36 = vpop.f32.mrb[69].mxu0 }
 0x1d7   :  { %v607_v37 = vadd.f32 %v606_v36, %v1421_v29  ;;  %v608_v38 = vpop.f32.mrb[70].mxu0  ;;  %894 = vadd.xlane.f32.xlu0 %v893_v1  ;;  %v896_v39 = vadd.f32 %v832_v33, %v831_v32 }
 0x1d8   :  { %v757_v40 = vmax.f32 %v605_v35, 0.0  ;;  %v609_v41 = vadd.f32 %v608_v38, %v1418_v13  ;;  %v610_v42 = vpop.f32.mrb[71].mxu0 }
 0x1d9   :  { %v758_v43 = vmax.f32 %v607_v37, 0.0  ;;  %v611_v44 = vadd.f32 %v610_v42, %v1421_v29 }
 0x1da   :  { %v759_v45 = vmax.f32 %v609_v41, 0.0  ;;  %v833_v46 = vmul.f32 %v1428_v17, %v757_v40 }
 0x1db   :  { %v760_v47 = vmax.f32 %v611_v44, 0.0  ;;  %897 = vadd.xlane.f32.xlu0 %v896_v39  ;;  %v834_v48 = vmul.f32 %v1432_v20, %v758_v43 }
 0x1dc   :  { %v835_v49 = vmul.f32 %v1428_v17, %v759_v45 }
 0x1dd   :  { %v836_v50 = vmul.f32 %v1432_v20, %v760_v47  ;;  %v614_v51 = vpop.f32.mrb[72].mxu0  ;;  %v899_v52 = vadd.f32 %v834_v48, %v833_v46 }
 0x1de   :  { %v615_v53 = vadd.f32 %v614_v51, %v1418_v13  ;;  %v616_v54 = vpop.f32.mrb[73].mxu0 }
 0x1df   :  { %v617_v55 = vadd.f32 %v616_v54, %v1421_v29  ;;  %v618_v56 = vpop.f32.mrb[74].mxu0  ;;  %900 = vadd.xlane.f32.xlu1 %v899_v52  ;;  %v902_v57 = vadd.f32 %v836_v50, %v835_v49 }
 0x1e0   :  { %v761_v58 = vmax.f32 %v615_v53, 0.0  ;;  %v619_v59 = vadd.f32 %v618_v56, %v1418_v13  ;;  %v620_v60 = vpop.f32.mrb[75].mxu0 }
 0x1e1   :  { %v762_v61 = vmax.f32 %v617_v55, 0.0  ;;  %v621_v62 = vadd.f32 %v620_v60, %v1421_v29 }
 0x1e2   :  { %v837_v63 = vmul.f32 %v1428_v17, %v761_v58  ;;  %v763_v0 = vmax.f32 %v619_v59, 0.0 }
 0x1e3   :  { %v838_v2 = vmul.f32 %v1432_v20, %v762_v61  ;;  %v764_v3 = vmax.f32 %v621_v62, 0.0  ;;  %903 = vadd.xlane.f32.xlu1 %v902_v57 }
 0x1e4   :  { %v839_v4 = vmul.f32 %v1428_v17, %v763_v0 }
 0x1e5   :  { %v840_v5 = vmul.f32 %v1432_v20, %v764_v3  ;;  %v624_v6 = vpop.f32.mrb[0].mxu1  ;;  %v905_v7 = vadd.f32 %v838_v2, %v837_v63 }
 0x1e6   :  { %v625_v8 = vadd.f32 %v624_v6, %v1418_v13  ;;  %v626_v9 = vpop.f32.mrb[1].mxu1 }
 0x1e7   :  { %v627_v10 = vadd.f32 %v626_v9, %v1421_v29  ;;  %v628_v11 = vpop.f32.mrb[2].mxu1  ;;  %906 = vadd.xlane.f32.xlu0 %v905_v7  ;;  %v908_v12 = vadd.f32 %v840_v5, %v839_v4 }
 0x1e8   :  { %v765_v30 = vmax.f32 %v625_v8, 0.0  ;;  %v629_v14 = vadd.f32 %v628_v11, %v1418_v13  ;;  %v630_v15 = vpop.f32.mrb[3].mxu1 }
 0x1e9   :  { %v766_v16 = vmax.f32 %v627_v10, 0.0  ;;  %v631_v18 = vadd.f32 %v630_v15, %v1421_v29  ;;  %909 = vadd.xlane.f32.xlu1 %v908_v12 }
 0x1ea   :  { %v841_v19 = vmul.f32 %v1428_v17, %v765_v30  ;;  %v767_v21 = vmax.f32 %v629_v14, 0.0 }
 0x1eb   :  { %v842_v22 = vmul.f32 %v1432_v20, %v766_v16  ;;  %v768_v23 = vmax.f32 %v631_v18, 0.0 }
 0x1ec   :  { %v843_v24 = vmul.f32 %v1428_v17, %v767_v21 }
 0x1ed   :  { %v844_v25 = vmul.f32 %v1432_v20, %v768_v23  ;;  %v634_v26 = vpop.f32.mrb[4].mxu1  ;;  %v911_v28 = vadd.f32 %v842_v22, %v841_v19 }
 0x1ee   :  { %v635_v31 = vadd.f32 %v634_v26, %v1418_v13  ;;  %v636_v27 = vpop.f32.mrb[5].mxu1 }
 0x1ef   :  { %v637_v32 = vadd.f32 %v636_v27, %v1421_v29  ;;  %v638_v33 = vpop.f32.mrb[6].mxu1  ;;  %912 = vadd.xlane.f32.xlu0 %v911_v28  ;;  %v914_v34 = vadd.f32 %v844_v25, %v843_v24 }
 0x1f0   :  { %v769_v1 = vmax.f32 %v635_v31, 0.0  ;;  %v639_v35 = vadd.f32 %v638_v33, %v1418_v13  ;;  %v640_v36 = vpop.f32.mrb[7].mxu1 }
 0x1f1   :  { %v770_v37 = vmax.f32 %v637_v32, 0.0  ;;  %v641_v38 = vadd.f32 %v640_v36, %v1421_v29  ;;  %915 = vadd.xlane.f32.xlu1 %v914_v34 }
 0x1f2   :  { %v845_v39 = vmul.f32 %v1428_v17, %v769_v1  ;;  %v771_v40 = vmax.f32 %v639_v35, 0.0 }
 0x1f3   :  { %v846_v41 = vmul.f32 %v1432_v20, %v770_v37  ;;  %v772_v42 = vmax.f32 %v641_v38, 0.0 }
 0x1f4   :  { %v847_v43 = vmul.f32 %v1428_v17, %v771_v40 }
 0x1f5   :  { %v848_v44 = vmul.f32 %v1432_v20, %v772_v42  ;;  %v644_v45 = vpop.f32.mrb[8].mxu1  ;;  %v917_v46 = vadd.f32 %v846_v41, %v845_v39 }
 0x1f6   :  { %v645_v47 = vadd.f32 %v644_v45, %v1418_v13  ;;  %v646_v48 = vpop.f32.mrb[9].mxu1 }
 0x1f7   :  { %v647_v49 = vadd.f32 %v646_v48, %v1421_v29  ;;  %v648_v50 = vpop.f32.mrb[10].mxu1  ;;  %918 = vadd.xlane.f32.xlu0 %v917_v46  ;;  %v920_v51 = vadd.f32 %v848_v44, %v847_v43 }
 0x1f8   :  { %v773_v52 = vmax.f32 %v645_v47, 0.0  ;;  %v649_v53 = vadd.f32 %v648_v50, %v1418_v13  ;;  %v650_v54 = vpop.f32.mrb[11].mxu1 }
 0x1f9   :  { %v774_v55 = vmax.f32 %v647_v49, 0.0  ;;  %v651_v56 = vadd.f32 %v650_v54, %v1421_v29  ;;  %921 = vadd.xlane.f32.xlu1 %v920_v51 }
 0x1fa   :  { %v849_v57 = vmul.f32 %v1428_v17, %v773_v52  ;;  %v775_v58 = vmax.f32 %v649_v53, 0.0 }
 0x1fb   :  { %v850_v59 = vmul.f32 %v1432_v20, %v774_v55  ;;  %v776_v60 = vmax.f32 %v651_v56, 0.0 }
 0x1fc   :  { %v851_v61 = vmul.f32 %v1428_v17, %v775_v58 }
 0x1fd   :  { %v852_v62 = vmul.f32 %v1432_v20, %v776_v60  ;;  %v654_v63 = vpop.f32.mrb[12].mxu1  ;;  %v923_v0 = vadd.f32 %v850_v59, %v849_v57 }
 0x1fe   :  { %v655_v2 = vadd.f32 %v654_v63, %v1418_v13  ;;  %v656_v3 = vpop.f32.mrb[13].mxu1 }
 0x1ff   :  { %v657_v4 = vadd.f32 %v656_v3, %v1421_v29  ;;  %v658_v5 = vpop.f32.mrb[14].mxu1  ;;  %924 = vadd.xlane.f32.xlu0 %v923_v0  ;;  %v926_v6 = vadd.f32 %v852_v62, %v851_v61 }
 0x200   :  { %v777_v7 = vmax.f32 %v655_v2, 0.0  ;;  %v659_v8 = vadd.f32 %v658_v5, %v1418_v13  ;;  %v660_v9 = vpop.f32.mrb[15].mxu1 }
 0x201   :  { %v778_v10 = vmax.f32 %v657_v4, 0.0  ;;  %v661_v11 = vadd.f32 %v660_v9, %v1421_v29  ;;  %927 = vadd.xlane.f32.xlu1 %v926_v6 }
 0x202   :  { %v853_v12 = vmul.f32 %v1428_v17, %v777_v7  ;;  %v779_v30 = vmax.f32 %v659_v8, 0.0 }
 0x203   :  { %v854_v14 = vmul.f32 %v1432_v20, %v778_v10  ;;  %v780_v15 = vmax.f32 %v661_v11, 0.0 }
 0x204   :  { %v855_v16 = vmul.f32 %v1428_v17, %v779_v30 }
 0x205   :  { %v856_v18 = vmul.f32 %v1432_v20, %v780_v15  ;;  %v664_v19 = vpop.f32.mrb[16].mxu1  ;;  %v929_v21 = vadd.f32 %v854_v14, %v853_v12 }
 0x206   :  { %v665_v22 = vadd.f32 %v664_v19, %v1418_v13  ;;  %v666_v23 = vpop.f32.mrb[17].mxu1 }
 0x207   :  { %v667_v24 = vadd.f32 %v666_v23, %v1421_v29  ;;  %v668_v25 = vpop.f32.mrb[18].mxu1  ;;  %930 = vadd.xlane.f32.xlu0 %v929_v21  ;;  %v932_v26 = vadd.f32 %v856_v18, %v855_v16 }
 0x208   :  { %v781_v28 = vmax.f32 %v665_v22, 0.0  ;;  %v669_v31 = vadd.f32 %v668_v25, %v1418_v13  ;;  %v670_v27 = vpop.f32.mrb[19].mxu1 }
 0x209   :  { %v782_v32 = vmax.f32 %v667_v24, 0.0  ;;  %v671_v33 = vadd.f32 %v670_v27, %v1421_v29  ;;  %933 = vadd.xlane.f32.xlu1 %v932_v26 }
 0x20a   :  { %v857_v34 = vmul.f32 %v1428_v17, %v781_v28  ;;  %v783_v1 = vmax.f32 %v669_v31, 0.0 }
 0x20b   :  { %v858_v35 = vmul.f32 %v1432_v20, %v782_v32  ;;  %v784_v36 = vmax.f32 %v671_v33, 0.0 }
 0x20c   :  { %v859_v37 = vmul.f32 %v1428_v17, %v783_v1 }
 0x20d   :  { %v860_v38 = vmul.f32 %v1432_v20, %v784_v36  ;;  %v674_v39 = vpop.f32.mrb[20].mxu1  ;;  %v935_v40 = vadd.f32 %v858_v35, %v857_v34 }
 0x20e   :  { %v675_v41 = vadd.f32 %v674_v39, %v1418_v13  ;;  %v676_v42 = vpop.f32.mrb[21].mxu1 }
 0x20f   :  { %v677_v43 = vadd.f32 %v676_v42, %v1421_v29  ;;  %v678_v44 = vpop.f32.mrb[22].mxu1  ;;  %936 = vadd.xlane.f32.xlu0 %v935_v40  ;;  %v938_v45 = vadd.f32 %v860_v38, %v859_v37 }
 0x210   :  { %v785_v46 = vmax.f32 %v675_v41, 0.0  ;;  %v679_v47 = vadd.f32 %v678_v44, %v1418_v13  ;;  %v680_v48 = vpop.f32.mrb[23].mxu1 }
 0x211   :  { %v786_v49 = vmax.f32 %v677_v43, 0.0  ;;  %v681_v50 = vadd.f32 %v680_v48, %v1421_v29  ;;  %939 = vadd.xlane.f32.xlu1 %v938_v45 }
 0x212   :  { %v861_v51 = vmul.f32 %v1428_v17, %v785_v46  ;;  %v787_v52 = vmax.f32 %v679_v47, 0.0 }
 0x213   :  { %v862_v53 = vmul.f32 %v1432_v20, %v786_v49  ;;  %v788_v54 = vmax.f32 %v681_v50, 0.0 }
 0x214   :  { %v863_v55 = vmul.f32 %v1428_v17, %v787_v52 }
 0x215   :  { %v864_v56 = vmul.f32 %v1432_v20, %v788_v54  ;;  %v684_v57 = vpop.f32.mrb[24].mxu1  ;;  %v941_v58 = vadd.f32 %v862_v53, %v861_v51 }
 0x216   :  { %v685_v59 = vadd.f32 %v684_v57, %v1418_v13  ;;  %v686_v60 = vpop.f32.mrb[25].mxu1 }
 0x217   :  { %v687_v61 = vadd.f32 %v686_v60, %v1421_v29  ;;  %v688_v62 = vpop.f32.mrb[26].mxu1  ;;  %942 = vadd.xlane.f32.xlu0 %v941_v58  ;;  %v944_v63 = vadd.f32 %v864_v56, %v863_v55 }
 0x218   :  { %v789_v0 = vmax.f32 %v685_v59, 0.0  ;;  %v689_v2 = vadd.f32 %v688_v62, %v1418_v13  ;;  %v690_v3 = vpop.f32.mrb[27].mxu1 }
 0x219   :  { %v790_v4 = vmax.f32 %v687_v61, 0.0  ;;  %v691_v5 = vadd.f32 %v690_v3, %v1421_v29  ;;  %945 = vadd.xlane.f32.xlu1 %v944_v63 }
 0x21a   :  { %v865_v6 = vmul.f32 %v1428_v17, %v789_v0  ;;  %v791_v7 = vmax.f32 %v689_v2, 0.0 }
 0x21b   :  { %v866_v8 = vmul.f32 %v1432_v20, %v790_v4  ;;  %v792_v9 = vmax.f32 %v691_v5, 0.0 }
 0x21c   :  { %v867_v10 = vmul.f32 %v1428_v17, %v791_v7 }
 0x21d   :  { %v868_v11 = vmul.f32 %v1432_v20, %v792_v9  ;;  %v694_v12 = vpop.f32.mrb[28].mxu1  ;;  %v947_v30 = vadd.f32 %v866_v8, %v865_v6 }
 0x21e   :  { %v695_v14 = vadd.f32 %v694_v12, %v1418_v13  ;;  %v696_v15 = vpop.f32.mrb[29].mxu1 }
 0x21f   :  { %v697_v16 = vadd.f32 %v696_v15, %v1421_v29  ;;  %v698_v18 = vpop.f32.mrb[30].mxu1  ;;  %948 = vadd.xlane.f32.xlu0 %v947_v30  ;;  %v950_v19 = vadd.f32 %v868_v11, %v867_v10 }
 0x220   :  { %v793_v21 = vmax.f32 %v695_v14, 0.0  ;;  %v699_v22 = vadd.f32 %v698_v18, %v1418_v13  ;;  %v700_v23 = vpop.f32.mrb[31].mxu1 }
 0x221   :  { %v794_v24 = vmax.f32 %v697_v16, 0.0  ;;  %v701_v25 = vadd.f32 %v700_v23, %v1421_v29  ;;  %951 = vadd.xlane.f32.xlu1 %v950_v19 }
 0x222   :  { %v869_v26 = vmul.f32 %v1428_v17, %v793_v21  ;;  %v795_v28 = vmax.f32 %v699_v22, 0.0 }
 0x223   :  { %v870_v31 = vmul.f32 %v1432_v20, %v794_v24  ;;  %v796_v27 = vmax.f32 %v701_v25, 0.0 }
 0x224   :  { %v871_v32 = vmul.f32 %v1428_v17, %v795_v28 }
 0x225   :  { %v872_v33 = vmul.f32 %v1432_v20, %v796_v27  ;;  %v704_v34 = vpop.f32.mrb[32].mxu1  ;;  %v953_v1 = vadd.f32 %v870_v31, %v869_v26 }
 0x226   :  { %v705_v35 = vadd.f32 %v704_v34, %v1418_v13  ;;  %v706_v36 = vpop.f32.mrb[33].mxu1 }
 0x227   :  { %v707_v37 = vadd.f32 %v706_v36, %v1421_v29  ;;  %v708_v38 = vpop.f32.mrb[34].mxu1  ;;  %954 = vadd.xlane.f32.xlu0 %v953_v1  ;;  %v956_v39 = vadd.f32 %v872_v33, %v871_v32 }
 0x228   :  { %v797_v40 = vmax.f32 %v705_v35, 0.0  ;;  %v709_v41 = vadd.f32 %v708_v38, %v1418_v13  ;;  %v710_v42 = vpop.f32.mrb[35].mxu1 }
 0x229   :  { %v798_v43 = vmax.f32 %v707_v37, 0.0  ;;  %v711_v44 = vadd.f32 %v710_v42, %v1421_v29  ;;  %957 = vadd.xlane.f32.xlu1 %v956_v39 }
 0x22a   :  { %v873_v45 = vmul.f32 %v1428_v17, %v797_v40  ;;  %v799_v46 = vmax.f32 %v709_v41, 0.0 }
 0x22b   :  { %v874_v47 = vmul.f32 %v1432_v20, %v798_v43  ;;  %v800_v48 = vmax.f32 %v711_v44, 0.0 }
 0x22c   :  { %v875_v49 = vmul.f32 %v1428_v17, %v799_v46 }
 0x22d   :  { %v876_v50 = vmul.f32 %v1432_v20, %v800_v48  ;;  %v714_v51 = vpop.f32.mrb[36].mxu1  ;;  %v959_v52 = vadd.f32 %v874_v47, %v873_v45 }
 0x22e   :  { %v715_v53 = vadd.f32 %v714_v51, %v1418_v13  ;;  %v716_v54 = vpop.f32.mrb[37].mxu1 }
 0x22f   :  { %v717_v55 = vadd.f32 %v716_v54, %v1421_v29  ;;  %v718_v56 = vpop.f32.mrb[38].mxu1  ;;  %960 = vadd.xlane.f32.xlu0 %v959_v52  ;;  %v962_v57 = vadd.f32 %v876_v50, %v875_v49 }
 0x230   :  { %v801_v58 = vmax.f32 %v715_v53, 0.0  ;;  %v719_v59 = vadd.f32 %v718_v56, %v1418_v13  ;;  %v720_v60 = vpop.f32.mrb[39].mxu1 }
 0x231   :  { %v802_v61 = vmax.f32 %v717_v55, 0.0  ;;  %v721_v62 = vadd.f32 %v720_v60, %v1421_v29  ;;  %963 = vadd.xlane.f32.xlu1 %v962_v57 }
 0x232   :  { %v877_v63 = vmul.f32 %v1428_v17, %v801_v58  ;;  %v803_v0 = vmax.f32 %v719_v59, 0.0 }
 0x233   :  { %v878_v2 = vmul.f32 %v1432_v20, %v802_v61  ;;  %v804_v3 = vmax.f32 %v721_v62, 0.0 }
 0x234   :  { %v879_v4 = vmul.f32 %v1428_v17, %v803_v0 }
 0x235   :  { %v880_v5 = vmul.f32 %v1432_v20, %v804_v3  ;;  %v724_v6 = vpop.f32.mrb[40].mxu1  ;;  %v965_v7 = vadd.f32 %v878_v2, %v877_v63 }
 0x236   :  { %v725_v8 = vadd.f32 %v724_v6, %v1418_v13  ;;  %v726_v9 = vpop.f32.mrb[41].mxu1 }
 0x237   :  { %v727_v10 = vadd.f32 %v726_v9, %v1421_v29  ;;  %v728_v11 = vpop.f32.mrb[42].mxu1  ;;  %966 = vadd.xlane.f32.xlu0 %v965_v7  ;;  %v968_v12 = vadd.f32 %v880_v5, %v879_v4 }
 0x238   :  { %v805_v30 = vmax.f32 %v725_v8, 0.0  ;;  %v729_v14 = vadd.f32 %v728_v11, %v1418_v13  ;;  %v730_v15 = vpop.f32.mrb[43].mxu1 }
 0x239   :  { %v806_v16 = vmax.f32 %v727_v10, 0.0  ;;  %v731_v18 = vadd.f32 %v730_v15, %v1421_v29  ;;  %969 = vadd.xlane.f32.xlu1 %v968_v12 }
 0x23a   :  { %v881_v19 = vmul.f32 %v1428_v17, %v805_v30  ;;  %v807_v21 = vmax.f32 %v729_v14, 0.0 }
 0x23b   :  { %v882_v22 = vmul.f32 %v1432_v20, %v806_v16  ;;  %v808_v23 = vmax.f32 %v731_v18, 0.0 }
 0x23c   :  { %v883_v24 = vmul.f32 %v1428_v17, %v807_v21 }
 0x23d   :  { %v884_v25 = vmul.f32 %v1432_v20, %v808_v23  ;;  %v734_v26 = vpop.f32.mrb[44].mxu1  ;;  %v971_v28 = vadd.f32 %v882_v22, %v881_v19 }
 0x23e   :  { %v735_v31 = vadd.f32 %v734_v26, %v1418_v13  ;;  %v736_v27 = vpop.f32.mrb[45].mxu1 }
 0x23f   :  { %v737_v32 = vadd.f32 %v736_v27, %v1421_v29  ;;  %v738_v33 = vpop.f32.mrb[46].mxu1  ;;  %972 = vadd.xlane.f32.xlu0 %v971_v28  ;;  %v974_v34 = vadd.f32 %v884_v25, %v883_v24 }
 0x240   :  { %v809_v1 = vmax.f32 %v735_v31, 0.0  ;;  %v739_v35 = vadd.f32 %v738_v33, %v1418_v13  ;;  %v740_v36 = vpop.f32.mrb[47].mxu1 }
 0x241   :  { %v810_v37 = vmax.f32 %v737_v32, 0.0  ;;  %v741_v38 = vadd.f32 %v740_v36, %v1421_v29  ;;  %975 = vadd.xlane.f32.xlu1 %v974_v34 }
 0x242   :  { %v885_v39 = vmul.f32 %v1428_v17, %v809_v1  ;;  %v811_v40 = vmax.f32 %v739_v35, 0.0 }
 0x243   :  { %v886_v41 = vmul.f32 %v1432_v20, %v810_v37  ;;  %v812_v42 = vmax.f32 %v741_v38, 0.0 }
 0x244   :  { %v887_v43 = vmul.f32 %v1428_v17, %v811_v40 }
 0x245   :  { %v888_v44 = vmul.f32 %v1432_v20, %v812_v42  ;;  %v744_v45 = vpop.f32.mrb[48].mxu1  ;;  %v977_v46 = vadd.f32 %v886_v41, %v885_v39 }
 0x246   :  { %v745_v47 = vadd.f32 %v744_v45, %v1418_v13  ;;  %v746_v48 = vpop.f32.mrb[49].mxu1 }
 0x247   :  { %v747_v49 = vadd.f32 %v746_v48, %v1421_v29  ;;  %v748_v50 = vpop.f32.mrb[50].mxu1  ;;  %978 = vadd.xlane.f32.xlu0 %v977_v46  ;;  %v980_v51 = vadd.f32 %v888_v44, %v887_v43 }
 0x248   :  { %v813_v52 = vmax.f32 %v745_v47, 0.0  ;;  %v749_v53 = vadd.f32 %v748_v50, %v1418_v13  ;;  %v750_v54 = vpop.f32.mrb[51].mxu1  ;;  %v1560_v13 = vld [vmem:[#allocation2] ss:$0 sm:$0xff] }
 0x249   :  { %v814_v55 = vmax.f32 %v747_v49, 0.0  ;;  %v751_v56 = vadd.f32 %v750_v54, %v1421_v29  ;;  %981 = vadd.xlane.f32.xlu1 %v980_v51 }
 0x24a   :  { %v889_v57 = vmul.f32 %v1428_v17, %v813_v52  ;;  %v815_v58 = vmax.f32 %v749_v53, 0.0 }
 0x24b   :  { %v890_v59 = vmul.f32 %v1432_v20, %v814_v55  ;;  %v816_v60 = vmax.f32 %v751_v56, 0.0 }
 0x24c   :  { %v891_v61 = vmul.f32 %v1428_v17, %v815_v58 }
 0x24d   :  { %v892_v62 = vmul.f32 %v1432_v20, %v816_v60  ;;  %v983_v63 = vadd.f32 %v890_v59, %v889_v57 }
 0x24f   :  { %984 = vadd.xlane.f32.xlu0 %v983_v63  ;;  %v986_v0 = vadd.f32 %v892_v62, %v891_v61 }
 0x251   :  { %987 = vadd.xlane.f32.xlu1 %v986_v0 }
 0x264   :  { %v895_v2 = vpop.xlane.xlu0 %894 }
 0x265   :  { %v996_v29 = vadd.f32 %v1560_v13, %v895_v2 }
 0x267   :  { %1029 = vst.msk [vmem:[%s1729_s7] sm:$0xff] %vm1028_vm2, %v996_v29 }
 0x268   :  { %v898_v3 = vpop.xlane.xlu0 %897 }
 0x269   :  { %v997_v17 = vadd.f32 %v1560_v13, %v898_v3 }
 0x26b   :  { %1030 = vst.msk [vmem:[%s1729_s7 + $0x8] sm:$0xff] %vm1028_vm2, %v997_v17 }
 0x26c   :  { %v901_v20 = vpop.xlane.xlu1 %900 }
 0x26d   :  { %v998_v4 = vadd.f32 %v1560_v13, %v901_v20 }
 0x26f   :  { %1031 = vst.msk [vmem:[%s1729_s7 + $0x10] sm:$0xff] %vm1028_vm2, %v998_v4 }
 0x270   :  { %v904_v5 = vpop.xlane.xlu1 %903 }
 0x271   :  { %v999_v6 = vadd.f32 %v1560_v13, %v904_v5 }
 0x273   :  { %1032 = vst.msk [vmem:[%s1729_s7 + $0x18] sm:$0xff] %vm1028_vm2, %v999_v6 }
 0x274   :  { %v907_v7 = vpop.xlane.xlu0 %906 }
 0x275   :  { %v1000_v8 = vadd.f32 %v1560_v13, %v907_v7 }
 0x276   :  { %v910_v9 = vpop.xlane.xlu1 %909 }
 0x277   :  { %1033 = vst.msk [vmem:[%s1729_s7 + $0x20] sm:$0xff] %vm1028_vm2, %v1000_v8  ;;  %v1001_v10 = vadd.f32 %v1560_v13, %v910_v9 }
 0x279   :  { %1034 = vst.msk [vmem:[%s1729_s7 + $0x28] sm:$0xff] %vm1028_vm2, %v1001_v10 }
 0x27c   :  { %v913_v11 = vpop.xlane.xlu0 %912 }
 0x27d   :  { %v1002_v12 = vadd.f32 %v1560_v13, %v913_v11 }
 0x27e   :  { %v916_v30 = vpop.xlane.xlu1 %915 }
 0x27f   :  { %1035 = vst.msk [vmem:[%s1729_s7 + $0x30] sm:$0xff] %vm1028_vm2, %v1002_v12  ;;  %v1003_v14 = vadd.f32 %v1560_v13, %v916_v30 }
 0x281   :  { %1036 = vst.msk [vmem:[%s1729_s7 + $0x38] sm:$0xff] %vm1028_vm2, %v1003_v14 }
 0x284   :  { %v919_v15 = vpop.xlane.xlu0 %918 }
 0x285   :  { %v1004_v16 = vadd.f32 %v1560_v13, %v919_v15 }
 0x286   :  { %v922_v18 = vpop.xlane.xlu1 %921 }
 0x287   :  { %1037 = vst.msk [vmem:[%s1729_s7 + $0x40] sm:$0xff] %vm1028_vm2, %v1004_v16  ;;  %v1005_v19 = vadd.f32 %v1560_v13, %v922_v18 }
 0x289   :  { %1038 = vst.msk [vmem:[%s1729_s7 + $0x48] sm:$0xff] %vm1028_vm2, %v1005_v19 }
 0x28c   :  { %v925_v21 = vpop.xlane.xlu0 %924 }
 0x28d   :  { %v1006_v22 = vadd.f32 %v1560_v13, %v925_v21 }
 0x28e   :  { %v928_v23 = vpop.xlane.xlu1 %927 }
 0x28f   :  { %1039 = vst.msk [vmem:[%s1729_s7 + $0x50] sm:$0xff] %vm1028_vm2, %v1006_v22  ;;  %v1007_v24 = vadd.f32 %v1560_v13, %v928_v23 }
 0x291   :  { %1040 = vst.msk [vmem:[%s1729_s7 + $0x58] sm:$0xff] %vm1028_vm2, %v1007_v24 }
 0x294   :  { %v931_v25 = vpop.xlane.xlu0 %930 }
 0x295   :  { %v1008_v26 = vadd.f32 %v1560_v13, %v931_v25 }
 0x296   :  { %v934_v28 = vpop.xlane.xlu1 %933 }
 0x297   :  { %1041 = vst.msk [vmem:[%s1729_s7 + $0x60] sm:$0xff] %vm1028_vm2, %v1008_v26  ;;  %v1009_v31 = vadd.f32 %v1560_v13, %v934_v28 }
 0x299   :  { %1042 = vst.msk [vmem:[%s1729_s7 + $0x68] sm:$0xff] %vm1028_vm2, %v1009_v31 }
 0x29c   :  { %v937_v27 = vpop.xlane.xlu0 %936 }
 0x29d   :  { %v1010_v32 = vadd.f32 %v1560_v13, %v937_v27 }
 0x29e   :  { %v940_v33 = vpop.xlane.xlu1 %939 }
 0x29f   :  { %1043 = vst.msk [vmem:[%s1729_s7 + $0x70] sm:$0xff] %vm1028_vm2, %v1010_v32  ;;  %v1011_v34 = vadd.f32 %v1560_v13, %v940_v33 }
 0x2a1   :  { %1044 = vst.msk [vmem:[%s1729_s7 + $0x78] sm:$0xff] %vm1028_vm2, %v1011_v34 }
 0x2a4   :  { %v943_v1 = vpop.xlane.xlu0 %942 }
 0x2a5   :  { %v1012_v35 = vadd.f32 %v1560_v13, %v943_v1 }
 0x2a6   :  { %v946_v36 = vpop.xlane.xlu1 %945 }
 0x2a7   :  { %1045 = vst.msk [vmem:[%s1729_s7 + $0x80] sm:$0xff] %vm1028_vm2, %v1012_v35  ;;  %v1013_v37 = vadd.f32 %v1560_v13, %v946_v36 }
 0x2a9   :  { %1046 = vst.msk [vmem:[%s1729_s7 + $0x88] sm:$0xff] %vm1028_vm2, %v1013_v37 }
 0x2ac   :  { %v949_v38 = vpop.xlane.xlu0 %948 }
 0x2ad   :  { %v1014_v39 = vadd.f32 %v1560_v13, %v949_v38 }
 0x2ae   :  { %v952_v40 = vpop.xlane.xlu1 %951 }
 0x2af   :  { %1047 = vst.msk [vmem:[%s1729_s7 + $0x90] sm:$0xff] %vm1028_vm2, %v1014_v39  ;;  %v1015_v41 = vadd.f32 %v1560_v13, %v952_v40 }
 0x2b1   :  { %1048 = vst.msk [vmem:[%s1729_s7 + $0x98] sm:$0xff] %vm1028_vm2, %v1015_v41 }
 0x2b4   :  { %v955_v42 = vpop.xlane.xlu0 %954 }
 0x2b5   :  { %v1016_v43 = vadd.f32 %v1560_v13, %v955_v42 }
 0x2b6   :  { %v958_v44 = vpop.xlane.xlu1 %957 }
 0x2b7   :  { %1049 = vst.msk [vmem:[%s1729_s7 + $0xa0] sm:$0xff] %vm1028_vm2, %v1016_v43  ;;  %v1017_v45 = vadd.f32 %v1560_v13, %v958_v44 }
 0x2b9   :  { %1050 = vst.msk [vmem:[%s1729_s7 + $0xa8] sm:$0xff] %vm1028_vm2, %v1017_v45 }
 0x2bc   :  { %v961_v46 = vpop.xlane.xlu0 %960 }
 0x2bd   :  { %v1018_v47 = vadd.f32 %v1560_v13, %v961_v46 }
 0x2be   :  { %v964_v48 = vpop.xlane.xlu1 %963 }
 0x2bf   :  { %1051 = vst.msk [vmem:[%s1729_s7 + $0xb0] sm:$0xff] %vm1028_vm2, %v1018_v47  ;;  %v1019_v49 = vadd.f32 %v1560_v13, %v964_v48 }
 0x2c1   :  { %1052 = vst.msk [vmem:[%s1729_s7 + $0xb8] sm:$0xff] %vm1028_vm2, %v1019_v49 }
 0x2c4   :  { %v967_v50 = vpop.xlane.xlu0 %966 }
 0x2c5   :  { %v1020_v51 = vadd.f32 %v1560_v13, %v967_v50 }
 0x2c6   :  { %v970_v52 = vpop.xlane.xlu1 %969 }
 0x2c7   :  { %1053 = vst.msk [vmem:[%s1729_s7 + $0xc0] sm:$0xff] %vm1028_vm2, %v1020_v51  ;;  %v1021_v53 = vadd.f32 %v1560_v13, %v970_v52 }
 0x2c9   :  { %1054 = vst.msk [vmem:[%s1729_s7 + $0xc8] sm:$0xff] %vm1028_vm2, %v1021_v53 }
 0x2cc   :  { %v973_v54 = vpop.xlane.xlu0 %972 }
 0x2cd   :  { %v1022_v55 = vadd.f32 %v1560_v13, %v973_v54 }
 0x2ce   :  { %v976_v56 = vpop.xlane.xlu1 %975 }
 0x2cf   :  { %1055 = vst.msk [vmem:[%s1729_s7 + $0xd0] sm:$0xff] %vm1028_vm2, %v1022_v55  ;;  %v1023_v57 = vadd.f32 %v1560_v13, %v976_v56 }
 0x2d1   :  { %1056 = vst.msk [vmem:[%s1729_s7 + $0xd8] sm:$0xff] %vm1028_vm2, %v1023_v57 }
 0x2d4   :  { %v979_v58 = vpop.xlane.xlu0 %978 }
 0x2d5   :  { %v1024_v59 = vadd.f32 %v1560_v13, %v979_v58 }
 0x2d6   :  { %v982_v60 = vpop.xlane.xlu1 %981 }
 0x2d7   :  { %1057 = vst.msk [vmem:[%s1729_s7 + $0xe0] sm:$0xff] %vm1028_vm2, %v1024_v59  ;;  %v1025_v61 = vadd.f32 %v1560_v13, %v982_v60 }
 0x2d9   :  { %1058 = vst.msk [vmem:[%s1729_s7 + $0xe8] sm:$0xff] %vm1028_vm2, %v1025_v61 }
 0x2dc   :  { %v985_v62 = vpop.xlane.xlu0 %984 }
 0x2dd   :  { %v1026_v63 = vadd.f32 %v1560_v13, %v985_v62 }
 0x2de   :  { %v988_v0 = vpop.xlane.xlu1 %987 }
 0x2df   :  { %1059 = vst.msk [vmem:[%s1729_s7 + $0xf0] sm:$0xff] %vm1028_vm2, %v1026_v63  ;;  %v1027_v2 = vadd.f32 %v1560_v13, %v988_v0 }
 0x2e1   :  { %1060 = vst.msk [vmem:[%s1729_s7 + $0xf8] sm:$0xff] %vm1028_vm2, %v1027_v2 }
 0x2e2   :  { %1065 = vsyncpa [#allocation4], 1 }

</bundles_post_ra>
